<compile_context>
chip_gen: v6e
topology: v6e:2x2x1
jax: 0.10.0
libtpu: 0.0.40
codegen_flags: <defaults>
</compile_context>

<pallas_src>
import functools

import jax
import jax.numpy as jnp
from jax.experimental import pallas as pl
from jax.experimental.pallas import tpu as pltpu


def _cdiv(a, b):
    return (a + b - 1) // b


def _round_up(a, b):
    return _cdiv(a, b) * b


def _choose_chunk(total_elems, num_grids):
    """Number of x elements packed per kernel row.

    Largest power-of-two divisor of the element count, <= 64 (balances MXU
    issue rate vs. MAC count for the expansion matmul), with a bounded lane
    width chunk*G.  For the module default G=8 this gives chunk*G >= 128,
    i.e. fully lane-dense output stores.
    """
    best = 1
    for c in (2, 4, 8, 16, 32, 64):
        if total_elems % c == 0 and c * num_grids <= 1024:
            best = c
    return best


def _rbf_kernel(x_ref, e_ref, c_ref, o_ref, *, sub_rows, n_sub):
    # x_ref: (tr, chunk)       f32 input rows (chunk flattened x elements each)
    # e_ref: (chunk, chunk*G)  f32 0/1 expansion matrix, E[d, d*G + g] = 1
    # c_ref: (1, chunk*G)      f32 tiled grid centers, c[0, d*G + g] = grid[g]
    # o_ref: (tr, chunk*G)     o[r, d*G + g] = exp(-(x[r, d] - grid[g])**2)
    e = e_ref[...]
    c = c_ref[...]

    def body(s, carry):
        r0 = pl.multiple_of(s * sub_rows, sub_rows)
        xs = x_ref[pl.ds(r0, sub_rows), :]
        # Lane expansion x[r, d] -> x_exp[r, d*G + g] on the (idle) MXU.  The
        # selection matrix is exact (0/1); HIGHEST keeps x at f32 accuracy.
        xe = jnp.dot(xs, e, preferred_element_type=jnp.float32,
                     precision=jax.lax.Precision.HIGHEST)
        d = xe - c
        o_ref[pl.ds(r0, sub_rows), :] = jnp.exp(-(d * d)).astype(o_ref.dtype)
        return carry

    jax.lax.fori_loop(0, n_sub, body, 0)


def radial_basis_function(x, grid, *, out_dtype=jnp.float32,
                          vmem_block_budget_bytes=16 * 1024 * 1024):
    """exp(-(x[..., None] - grid)**2) via a Pallas TPU kernel.

    Returns x.shape + (G,) in exactly the PyTorch memory layout.
    """
    orig_shape = x.shape
    G = int(grid.shape[0])
    out_dtype = jnp.dtype(out_dtype)

    if x.size == 0:
        return jnp.zeros(orig_shape + (G,), out_dtype)

    xf = x.reshape(-1).astype(jnp.float32)         # free (contiguous) reshape
    L = xf.shape[0]
    chunk = _choose_chunk(L, G)                    # x elements per kernel row
    W = chunk * G                                  # output lane width
    R = L // chunk
    x2 = xf.reshape(R, chunk)                      # free reshape

    # Constant operands (stay resident in VMEM via constant index maps).
    e_mat = jnp.repeat(jnp.eye(chunk, dtype=jnp.float32), G, axis=1)  # (chunk, W)
    c_tile = jnp.tile(grid.astype(jnp.float32), chunk).reshape(1, W)  # (1, W)

    # --- tile sizing -------------------------------------------------------
    # In-kernel sub-chunk: keep each intermediate value around 128 KiB so the
    # elementwise chain lives in vregs (no spill) regardless of tile size.
    sub = max(8, min(512, (32 * 1024) // W))
    sub = (sub // 8) * 8

    # Row tile from a VMEM budget (double-buffered input + output blocks).
    out_isz = out_dtype.itemsize
    per_row = 2 * (chunk * 4 + W * out_isz)
    tr = max(sub, min(8192, vmem_block_budget_bytes // per_row))
    tr = (tr // sub) * sub
    if _cdiv(R, tr) == 1 and R >= 2 * sub:
        # Prefer >=2 row blocks so both TensorCores (v7x) / megacore get work.
        tr = _round_up(_cdiv(R, 2), sub)
    tr = min(tr, R)
    sub_rows = sub if tr % sub == 0 else tr        # tiny inputs: one sub-chunk
    n_sub = tr // sub_rows
    num_blocks = _cdiv(R, tr)                      # partial last block: masked

    kernel = functools.partial(_rbf_kernel, sub_rows=sub_rows, n_sub=n_sub)

    out2 = pl.pallas_call(
        kernel,
        out_shape=jax.ShapeDtypeStruct((R, W), out_dtype),
        grid=(num_blocks,),
        in_specs=[
            pl.BlockSpec((tr, chunk), lambda i: (i, 0)),   # x rows
            pl.BlockSpec((chunk, W), lambda i: (0, 0)),    # expansion matrix
            pl.BlockSpec((1, W), lambda i: (0, 0)),        # tiled grid centers
        ],
        out_specs=pl.BlockSpec((tr, W), lambda i: (i, 0)),
        compiler_params=pltpu.CompilerParams(
            dimension_semantics=("parallel",),
            vmem_limit_bytes=32 * 1024 * 1024,
        ),
    )(x2, e_mat, c_tile)

    # (R, W) row-major == x.shape + (G,) row-major: metadata-only reshape.
    return out2.reshape(*orig_shape, G)


if __name__ == "__main__":
    # Deterministic parameters, mirroring the module __init__.
    grid_min, grid_max, num_grids = -2.0, 2.0, 8
    rbf_grid = jnp.linspace(grid_min, grid_max, num_grids, dtype=jnp.float32)

    # Small input: batch=2, seq=128, hidden=128 (exercises 2 grid steps and
    # the in-kernel sub-chunk loop).
    key = jax.random.PRNGKey(0)
    x = jax.random.normal(key, (2, 128, 128), dtype=jnp.float32)

    y = jax.block_until_ready(radial_basis_function(x, rbf_grid))
    y_ref = jnp.exp(-(x[..., None] - rbf_grid) ** 2)
    assert y.shape == x.shape + (num_grids,)
    assert jnp.allclose(y, y_ref, atol=1e-5, rtol=1e-5)

    # Feature dim that is not a multiple of 128: still lane-dense because the
    # kernel tiles the flattened element stream, not the feature axis.
    x_odd = jax.random.normal(jax.random.PRNGKey(0), (2, 8, 100),
                              dtype=jnp.float32)
    y_odd = jax.block_until_ready(radial_basis_function(x_odd, rbf_grid))
    y_odd_ref = jnp.exp(-(x_odd[..., None] - rbf_grid) ** 2)
    assert y_odd.shape == x_odd.shape + (num_grids,)
    assert jnp.allclose(y_odd, y_odd_ref, atol=1e-5, rtol=1e-5)

    # Optional bf16 writeback (halves the dominant HBM write traffic); the
    # compute stays f32, so only the final rounding differs (~3 digits).
    y_bf16 = jax.block_until_ready(
        radial_basis_function(x, rbf_grid, out_dtype=jnp.bfloat16))
    assert y_bf16.dtype == jnp.bfloat16
    assert jnp.allclose(y_bf16.astype(jnp.float32), y_ref, atol=1e-2, rtol=1e-2)

    print("KERNEL_OK")
</pallas_src>

<mosaic_0001>
module attributes {stable_mosaic.version = 11 : i64} {
  func.func @_rbf_kernel(%arg0: i32, %arg1: memref<256x64xf32, #tpu.memory_space<vmem>>, %arg2: memref<64x512xf32, #tpu.memory_space<vmem>>, %arg3: memref<1x512xf32, #tpu.memory_space<vmem>>, %arg4: memref<256x512xf32, #tpu.memory_space<vmem>>) attributes {dimension_semantics = [#tpu.dimension_semantics<parallel>], iteration_bounds = array<i64: 2>, scalar_prefetch = 0 : i64, scratch_operands = 0 : i64, tpu.core_type = #tpu.core_type<tc>, window_params = [{transform_indices = @transform_0, window_bounds = array<i64: 256, 64>}, {pipeline_mode = #tpu.pipeline_mode<synchronous>, transform_indices = @transform_1, window_bounds = array<i64: 64, 512>}, {pipeline_mode = #tpu.pipeline_mode<synchronous>, transform_indices = @transform_2, window_bounds = array<i64: 1, 512>}, {transform_indices = @transform_3, window_bounds = array<i64: 256, 512>}]} {
    %c0 = arith.constant 0 : index
    %c0_0 = arith.constant 0 : index
    %0 = vector.load %arg2[%c0, %c0_0] : memref<64x512xf32, #tpu.memory_space<vmem>>, vector<64x512xf32>
    %c0_1 = arith.constant 0 : index
    %c0_2 = arith.constant 0 : index
    %1 = vector.load %arg3[%c0_1, %c0_2] : memref<1x512xf32, #tpu.memory_space<vmem>>, vector<1x512xf32>
    %c0_i32 = arith.constant 0 : i32
    %c4_i32 = arith.constant 4 : i32
    %2 = arith.addi %c0_i32, %c4_i32 : i32
    %c1_i32 = arith.constant 1 : i32
    scf.for %arg5 = %c0_i32 to %2 step %c1_i32  : i32 {
      %c64_i32 = arith.constant 64 : i32
      %3 = arith.muli %arg5, %c64_i32 : i32
      %4 = tpu.assume_multiple %3, 64 : i32
      %5 = arith.index_cast %4 : i32 to index
      %c0_4 = arith.constant 0 : index
      %6 = vector.load %arg1[%5, %c0_4] : memref<256x64xf32, #tpu.memory_space<vmem>>, vector<64x64xf32>
      %cst = arith.constant dense<0.000000e+00> : vector<64x512xf32>
      %7 = tpu.matmul %6, %0, %cst {dimension_numbers = #tpu.dot_dimension_numbers<[1], [0], [0], [1], [0, 0, 1, 1], [], []>, precision = #tpu.contract_precision<fp32>} : vector<64x64xf32>, vector<64x512xf32>, vector<64x512xf32> -> vector<64x512xf32>
      %8 = vector.broadcast %1 : vector<1x512xf32> to vector<64x512xf32>
      %9 = arith.subf %7, %8 : vector<64x512xf32>
      %10 = arith.mulf %9, %9 : vector<64x512xf32>
      %cst_5 = arith.constant 0.000000e+00 : f32
      %11 = vector.broadcast %cst_5 : f32 to vector<64x512xf32>
      %12 = arith.subf %11, %10 : vector<64x512xf32>
      %13 = math.exp %12 : vector<64x512xf32>
      %14 = arith.index_cast %4 : i32 to index
      %c0_6 = arith.constant 0 : index
      %15 = vector.load %arg4[%14, %c0_6] : memref<256x512xf32, #tpu.memory_space<vmem>>, vector<64x512xf32>
      tpu.vector_store %arg4[%14, %c0_6], %13 {strides = array<i32>} : memref<256x512xf32, #tpu.memory_space<vmem>>, vector<64x512xf32>,
    }
    %c4_i32_3 = arith.constant 4 : i32
    return
  }
  func.func @transform_0(%arg0: i32) -> (i32, i32) {
    %c0_i32 = arith.constant 0 : i32
    %c0_i32_0 = arith.constant 0 : i32
    return %arg0, %c0_i32 : i32, i32
  }
  func.func @transform_1(%arg0: i32) -> (i32, i32) {
    %c0_i32 = arith.constant 0 : i32
    %c0_i32_0 = arith.constant 0 : i32
    %c0_i32_1 = arith.constant 0 : i32
    return %c0_i32, %c0_i32_0 : i32, i32
  }
  func.func @transform_2(%arg0: i32) -> (i32, i32) {
    %c0_i32 = arith.constant 0 : i32
    %c0_i32_0 = arith.constant 0 : i32
    %c0_i32_1 = arith.constant 0 : i32
    return %c0_i32, %c0_i32_0 : i32, i32
  }
  func.func @transform_3(%arg0: i32) -> (i32, i32) {
    %c0_i32 = arith.constant 0 : i32
    %c0_i32_0 = arith.constant 0 : i32
    return %arg0, %c0_i32 : i32, i32
  }
}

</mosaic_0001>

<bundles_post_ra>
// kernel: tpu_custom_call.1
= control target key start
LH: loop header
LB: loop body
LE: loop exit
PB: predicated region body
PF: predicated region fallthrough
CT: control target
= control target key end

     0   :  { %8 = vsyncpa [#allocation3], 0  ;;  %s4290_s0 = inlined_call_operand.vmem [shape: f32[512,64], index: 0, kind: input, shape index: {}]   ;;  %s4291_s1 = inlined_call_operand.vmem [shape: f32[64,512], index: 1, kind: input, shape index: {}]   ;;  %s4292_s2 = inlined_call_operand.vmem [shape: f32[1,512], index: 2, kind: input, shape index: {}]   ;;  %s4293_s3 = inlined_call_operand.hbm [shape: f32[512,512], index: 3, kind: output, shape index: {}]  }
   0x1   :  { %10 = vsyncpa [#allocation3 + $0x1], 0  ;;  %s2757_s12 = smov 0   ;;  %s2759_s13 = smov 0  }
   0x2   :  { %s2761_s14 = smov 0   ;;  %s2763_s15 = smov 0  }
   0x3 LB: > { %s2778_s16 = sadd.s32 4294967295, %s2727_s15   ;;  %s2530_s17 = sadd.s32 4294967294, %s2727_s15   ;;  %s2727_s15 = sphi %s2763_s15, %s4558_s15   ;;  %s2723_s14 = sphi %s2761_s14, %s4557_s14   ;;  %s2719_s13 = sphi %s2759_s13, %s4556_s13   ;;  %s2715_s12 = sphi %s2757_s12, %s4555_s12  }
   0x4   : > { %s2782_s18 = sadd.s32 1, %s2727_s15   ;;  %s91_s19 = sadd.s32 1, %s2723_s14 }
   0x5   : > { %s88_s20 = ssub.s32 %s2727_s15, %s2782_s18  ;;  %p101_p0 = scmp.ne.s32.totalorder %s2723_s14, %s2719_s13 }
   0x6   : > { %p89_p1 = scmp.eq.s32.totalorder %s88_s20, 0  ;;  %p102_p2 = scmp.eq.s32.totalorder %s2778_s16, 1 }
   0x7   : > { %p107_p3 = scmp.ne.s32.totalorder %s2719_s13, %s2715_s12  ;;  %p108_p4 = scmp.eq.s32.totalorder %s2530_s17, 1 }
   0x8   : > { %s2793_s21 = scalar_select %p89_p1, %s2723_s14, %s91_s19  }
   0x9   : > { %p2795_p5 = por %p102_p2, %p101_p0  ;;  %p2799_p6 = por %p108_p4, %p107_p3 }
   0xa   : > { %p2533_p7 = scmp.ge.s32.totalorder %s2727_s15, 1  ;;  %p141_p8 = scmp.lt.s32.totalorder %s2727_s15, 3 }
   0xc   : > { %p142_p9 = pnand %p2533_p7, %p141_p8 }
   0xe   : > { %145 = sbr.rel (%p142_p9) target bundleno = 495 (0x1ef), region = 32 }
  0x13   : > { %s162_s24 = sand.u32 1, %s2719_s13   ;;  %s2535_s25 = sshll.u32 %s2778_s16, 5  ;;  %v2810_v0 = vld [vmem:[%s4291_s1] sm:$0xff]  ;;  %v2815_v1 = vld [vmem:[%s4291_s1 + $0x8] sm:$0xff]  ;;  %v2820_v2 = vld [vmem:[%s4291_s1 + $0x10] sm:$0xff] }
  0x14   : > { %4375 = vst [vmem:[#allocation5_spill] sm:$0xff] %v2810_v0  ;;  %4376 = vst [vmem:[#allocation6_spill] sm:$0xff] %v2815_v1  ;;  %s2824_s5 = sshll.u32 %s162_s24, 10  ;;  %p166_p10 = scmp.lt.s32.totalorder %s2535_s25, 63  ;;  %v2829_v3 = vld [vmem:[%s4291_s1 + $0x18] sm:$0xff]  ;;  %v2834_v4 = vld [vmem:[%s4291_s1 + $0x20] sm:$0xff] }
  0x15   : > { %4377 = vst [vmem:[#allocation7_spill] sm:$0xff] %v2820_v2  ;;  %4378 = vst [vmem:[#allocation8_spill] sm:$0xff] %v2829_v3  ;;  %v2839_v5 = vld [vmem:[%s4291_s1 + $0x28] sm:$0xff]  ;;  %v2844_v6 = vld [vmem:[%s4291_s1 + $0x30] sm:$0xff]  ;;  %s2982_s10 = smov 0  }
  0x16   : > { %4379 = vst [vmem:[#allocation9_spill] sm:$0xff] %v2834_v4  ;;  %4380 = vst [vmem:[#allocation10_spill] sm:$0xff] %v2839_v5  ;;  %v2849_v7 = vld [vmem:[%s4291_s1 + $0x38] sm:$0xff]  ;;  %v2854_v8 = vld [vmem:[%s4291_s1 + $0x40] sm:$0xff]  ;;  %s4560_s25 = smov (!%p166_p10, %s2535_s25), 63 }
  0x17   : > { %4381 = vst [vmem:[#allocation11_spill] sm:$0xff] %v2844_v6  ;;  %4382 = vst [vmem:[#allocation12_spill] sm:$0xff] %v2849_v7  ;;  %v2859_v9 = vld [vmem:[%s4291_s1 + $0x48] sm:$0xff]  ;;  %v2864_v10 = vld [vmem:[%s4291_s1 + $0x50] sm:$0xff]  ;;  %s2536_s26 = sshll.u32 %s4560_s25, 3  ;;  %s164_s25 = scalar_lea.vmem [#allocation2], %s2824_s5 }
  0x18   : > { %4383 = vst [vmem:[#allocation13_spill] sm:$0xff] %v2854_v8  ;;  %4384 = vst [vmem:[#allocation14_spill] sm:$0xff] %v2859_v9  ;;  %v2869_v11 = vld [vmem:[%s4291_s1 + $0x58] sm:$0xff]  ;;  %v2874_v12 = vld [vmem:[%s4291_s1 + $0x60] sm:$0xff]  ;;  %s2904_s9 = scalar_lea.vmem %s4290_s0, %s2536_s26 }
  0x19   : > { %4385 = vst [vmem:[#allocation15_spill] sm:$0xff] %v2864_v10  ;;  %4386 = vst [vmem:[#allocation16_spill] sm:$0xff] %v2869_v11  ;;  %v2879_v13 = vld [vmem:[%s4291_s1 + $0x68] sm:$0xff]  ;;  %v2884_v14 = vld [vmem:[%s4291_s1 + $0x70] sm:$0xff] }
  0x1a   : > { %4387 = vst [vmem:[#allocation17_spill] sm:$0xff] %v2874_v12  ;;  %4388 = vst [vmem:[#allocation18_spill] sm:$0xff] %v2879_v13  ;;  %v2889_v15 = vld [vmem:[%s4291_s1 + $0x78] sm:$0xff]  ;;  %v2894_v16 = vld [vmem:[%s4291_s1 + $0x80] sm:$0xff] }
  0x1b   : > { %4389 = vst [vmem:[#allocation19_spill] sm:$0xff] %v2884_v14  ;;  %4390 = vst [vmem:[#allocation20_spill] sm:$0xff] %v2889_v15  ;;  %v2899_v17 = vld [vmem:[%s4291_s1 + $0x88] sm:$0xff]  ;;  %v2909_v18 = vld [vmem:[%s4291_s1 + $0x90] sm:$0xff] }
  0x1c   : > { %4391 = vst [vmem:[#allocation21_spill] sm:$0xff] %v2894_v16  ;;  %4392 = vst [vmem:[#allocation22_spill] sm:$0xff] %v2899_v17  ;;  %v2914_v19 = vld [vmem:[%s4291_s1 + $0x98] sm:$0xff]  ;;  %v2919_v20 = vld [vmem:[%s4291_s1 + $0xa0] sm:$0xff] }
  0x1d   : > { %4393 = vst [vmem:[#allocation23_spill] sm:$0xff] %v2909_v18  ;;  %4394 = vst [vmem:[#allocation24_spill] sm:$0xff] %v2914_v19  ;;  %v2924_v21 = vld [vmem:[%s4291_s1 + $0xa8] sm:$0xff]  ;;  %v2929_v22 = vld [vmem:[%s4291_s1 + $0xb0] sm:$0xff] }
  0x1e   : > { %4395 = vst [vmem:[#allocation25_spill] sm:$0xff] %v2919_v20  ;;  %4396 = vst [vmem:[#allocation26_spill] sm:$0xff] %v2924_v21  ;;  %v2934_v23 = vld [vmem:[%s4291_s1 + $0xb8] sm:$0xff]  ;;  %v2939_v24 = vld [vmem:[%s4291_s1 + $0xc0] sm:$0xff] }
  0x1f   : > { %4397 = vst [vmem:[#allocation27_spill] sm:$0xff] %v2929_v22  ;;  %4398 = vst [vmem:[#allocation28_spill] sm:$0xff] %v2934_v23  ;;  %v2944_v25 = vld [vmem:[%s4291_s1 + $0xc8] sm:$0xff]  ;;  %v2949_v26 = vld [vmem:[%s4291_s1 + $0xd0] sm:$0xff] }
  0x20   : > { %4399 = vst [vmem:[#allocation29_spill] sm:$0xff] %v2939_v24  ;;  %4400 = vst [vmem:[#allocation30_spill] sm:$0xff] %v2944_v25  ;;  %v2954_v27 = vld [vmem:[%s4291_s1 + $0xd8] sm:$0xff]  ;;  %v2959_v28 = vld [vmem:[%s4291_s1 + $0xe0] sm:$0xff] }
  0x21   : > { %4401 = vst [vmem:[#allocation31_spill] sm:$0xff] %v2949_v26  ;;  %4402 = vst [vmem:[#allocation32_spill] sm:$0xff] %v2954_v27  ;;  %v2964_v29 = vld [vmem:[%s4291_s1 + $0xe8] sm:$0xff]  ;;  %v2969_v30 = vld [vmem:[%s4291_s1 + $0xf0] sm:$0xff] }
  0x22   : > { %4403 = vst [vmem:[#allocation33_spill] sm:$0xff] %v2959_v28  ;;  %4404 = vst [vmem:[#allocation34_spill] sm:$0xff] %v2964_v29  ;;  %v2974_v31 = vld [vmem:[%s4291_s1 + $0xf8] sm:$0xff]  ;;  %v2979_v32 = vld [vmem:[%s4292_s2] sm:$0xf] }
  0x23   : > { %4405 = vst [vmem:[#allocation35_spill] sm:$0xff] %v2969_v30  ;;  %4406 = vst [vmem:[#allocation36_spill] sm:$0xff] %v2974_v31 }
  0x24   : > { %4407 = vst [vmem:[#allocation37_spill] sm:$0xff] %v2979_v32 }
  0x25 LB: >> { %v4412_v0 = vld [vmem:[#allocation5_spill] sm:$0xff]  ;;  %v4413_v1 = vld [vmem:[#allocation6_spill] sm:$0xff]  ;;  %s2537_s11 = sshll.u32 %s2731_s10, 6  ;;  %vm221_vm0 = vcmask 523264   ;;  %v4436_v11 = vmov 0.0   ;;  %s210_s10 = sadd.s32 1, %s2731_s10   ;;  %s2731_s10 = sphi %s2982_s10, %s210_s10  }
  0x26   : >> { %v4414_v4 = vld [vmem:[#allocation9_spill] sm:$0xff]  ;;  %v4415_v5 = vld [vmem:[#allocation10_spill] sm:$0xff]  ;;  %s3065_s17 = scalar_lea.vmem %s2904_s9, %s2537_s11  ;;  %v3076_v60 = vand.u32 4294901760, %v4413_v1  ;;  %s4000_s19 = sshra.s32 %s2537_s11, 3 }
  0x27   : >> { %v4417_v8 = vld [vmem:[#allocation13_spill] sm:$0xff]  ;;  %v4418_v13 = vld [vmem:[#allocation18_spill] sm:$0xff]  ;;  %v3046_v51 = vand.u32 4294901760, %v4415_v5  ;;  %v3056_v55 = vand.u32 4294901760, %v4414_v4  ;;  %v215_v2 = vld [vmem:[%s3065_s17 + $0x10] sm:$0xff]  ;;  %s2546_s20 = sshll.u32 %s4000_s19, 5 }
  0x28   : >> { %v4410_v27 = vld [vmem:[#allocation32_spill] sm:$0xff]  ;;  %v4411_v26 = vld [vmem:[#allocation31_spill] sm:$0xff]  ;;  %v4419_v9 = vld [vmem:[#allocation14_spill] sm:$0xff]  ;;  %v3013_v41 = vand.u32 4294901760, %v4418_v13  ;;  %v3036_v47 = vand.u32 4294901760, %v4417_v8  ;;  %v229_v10 = vsel %vm221_vm0, %v215_v2, 0  ;;  %s4012_s27 = scalar_lea.vmem %s164_s25, %s2546_s20 [#allocation2] }
  0x29   : >> { %v4416_v29 = vld [vmem:[#allocation34_spill] sm:$0xff]  ;;  %v4420_v12 = vld [vmem:[#allocation17_spill] sm:$0xff]  ;;  %v3029_v45 = vand.u32 4294901760, %v4419_v9  ;;  %v220_v2 = vld [vmem:[%s3065_s17 + $0x38] sm:$0xff]  ;;  %p207_p11 = scmp.ge.s32.totalorder %s210_s10, 4  }
  0x2a   : >> { %v4408_v31 = vld [vmem:[#allocation36_spill] sm:$0xff]  ;;  %v4409_v30 = vld [vmem:[#allocation35_spill] sm:$0xff]  ;;  %v4421_v16 = vld [vmem:[#allocation21_spill] sm:$0xff]  ;;  %v2988_v33 = vand.u32 4294901760, %v4416_v29  ;;  %v3020_v43 = vand.u32 4294901760, %v4420_v12  ;;  %s2548_s28 = sshll.u32 (%p207_p11), %s2778_s16, 14 }
  0x2b   : >> { %v4422_v28 = vld [vmem:[#allocation33_spill] sm:$0xff]  ;;  %v4423_v25 = vld [vmem:[#allocation30_spill] sm:$0xff]  ;;  %v3009_v40 = vand.u32 4294901760, %v4421_v16  ;;  %s4242_s30 = scalar_lea.hbm (%p207_p11), %s4293_s3, %s2548_s28  ;;  %s2459_s4 = sshll.u32 (%p207_p11), %s164_s25, 4  ;;  %s4246_s4 = int_to_ptr.vmem [resolvable:$true] %s2459_s4 }
  0x2c   : >> { %v4424_v17 = vld [vmem:[#allocation22_spill] sm:$0xff]  ;;  %v4425_v24 = vld [vmem:[#allocation29_spill] sm:$0xff]  ;;  %v2991_v34 = vand.u32 4294901760, %v4422_v28  ;;  %v2994_v35 = vand.u32 4294901760, %v4423_v25  ;;  %263 = vmatprep.subr.mxu0 %v2988_v33  ;;  %v3017_v42 = vsub.f32 %v4416_v29, %v2988_v33  ;;  %v4323_v29 = vmov 0.0   ;;  %s4250_s6 = scalar_lea.sflag (%p207_p11), [#allocation3], %s162_s24 }
  0x2d   : >> { %v4426_v21 = vld [vmem:[#allocation26_spill] sm:$0xff]  ;;  %v4427_v20 = vld [vmem:[#allocation25_spill] sm:$0xff]  ;;  %v2997_v36 = vand.u32 4294901760, %v4425_v24  ;;  %v3006_v39 = vand.u32 4294901760, %v4424_v17  ;;  %326 = vmatprep.mubr.f32.mxu0 %v4323_v29  ;;  %559 = vmatprep.mubr.f32.mxu1 %v4323_v29  ;;  %s2663_s9 = scalar_lea.vmem (%p207_p11), %s4246_s4, 16384  ;;  %s2734_s16 = smov (%p207_p11), [#allocation2]  }
  0x2e   : >> { %v3000_v37 = vand.u32 4294901760, %v4426_v21  ;;  %v3003_v38 = vand.u32 4294901760, %v4427_v20  ;;  %v3024_v44 = vsub.f32 %v4422_v28, %v2991_v34  ;;  %265 = vmatpush1.msra.mxu0 %v2991_v34  ;;  %v3033_v46 = vsub.f32 %v4423_v25, %v2994_v35  ;;  %p2664_p12 = scmp.ne.s32.totalorder (%p207_p11), %s4246_s4, %s2663_s9  ;;  %s2667_s7 = sshll.u32 (%p207_p11), %s2734_s16, 4  ;;  %s2668_s7 = int_to_ptr.vmem [resolvable:$false] %s2667_s7 }
  0x2f   : >> { %v3040_v48 = vsub.f32 %v4425_v24, %v2997_v36  ;;  %267 = vmatprep.subr.mxu0 %v2994_v35  ;;  %v4295_v49 = vand.u32 4294901760, %v3017_v42  ;;  %v213_v24 = vld [vmem:[%s3065_s17] sm:$0xff]  ;;  %s2669_s8 = scalar_lea.vmem (%p207_p11), %s2668_s7, 32768  ;;  %p2670_p1 = scmp.lt.s32.totalorder (%p207_p11), %s4246_s4, %s2668_s7 }
  0x30   : >> { %v4294_v50 = vand.u32 4294901760, %v3024_v44  ;;  %v3050_v52 = vsub.f32 %v4426_v21, %v3000_v37  ;;  %269 = vmatpush1.msra.mxu0 %v2997_v36  ;;  %v4298_v53 = vand.u32 4294901760, %v3033_v46  ;;  %v3060_v56 = vsub.f32 %v4427_v20, %v3003_v38  ;;  %p2665_p13 = pnand (%p207_p11), %p2664_p12, %p2795_p5  ;;  %p2671_p2 = scmp.lt.s32.totalorder (%p207_p11), %s2669_s8, %s2663_s9 }
  0x31   : >> { %v4300_v54 = vand.u32 4294901760, %v3040_v48  ;;  %271 = vmatprep.subr.mxu0 %v3000_v37  ;;  %v434_v57 = vsub.f32 %v3017_v42, %v4295_v49 }
  0x32   : >> { %v440_v58 = vsub.f32 %v3024_v44, %v4294_v50  ;;  %273 = vmatpush1.msra.mxu0 %v3003_v38  ;;  %v446_v61 = vsub.f32 %v3033_v46, %v4298_v53  ;;  %v3088_v50 = vsub.f32 %v4424_v17, %v3006_v39  ;;  %v4428_v20 = vand.u32 4294901760, %v3050_v52  ;;  %p2666_p0 = pneg (%p207_p11), %p2665_p13  ;;  %p2672_p3 = por (%p207_p11), %p2671_p2, %p2670_p1 }
  0x33   : >> { %v452_v62 = vsub.f32 %v3040_v48, %v4300_v54  ;;  %275 = vmatprep.subr.mxu0 %v3006_v39  ;;  %v435_v49 = vand.u32 4294901760, %v434_v57  ;;  %v3095_v53 = vand.u32 4294901760, %v4412_v0  ;;  %v4429_v17 = vand.u32 4294901760, %v3060_v56 }
  0x34   : >> { %v441_v59 = vand.u32 4294901760, %v440_v58  ;;  %v458_v21 = vsub.f32 %v3050_v52, %v4428_v20  ;;  %277 = vmatpush1.msra.mxu0 %v3009_v40  ;;  %v447_v54 = vand.u32 4294901760, %v446_v61  ;;  %v4305_v28 = vand.u32 4294901760, %v3088_v50  ;;  %v214_v58 = vld [vmem:[%s3065_s17 + $0x8] sm:$0xff]  ;;  %p2673_p4 = pnand (%p207_p11), %p2672_p3, %p2666_p0 }
  0x35   : >> { %v453_v63 = vand.u32 4294901760, %v452_v62  ;;  %v464_v25 = vsub.f32 %v3060_v56, %v4429_v17  ;;  %279 = vmatprep.subr.mxu0 %v3013_v41  ;;  %436 = vmatprep.subr.mxu1 %v435_v49  ;;  %v3106_v20 = vsub.f32 %v4421_v16, %v3009_v40  ;;  %v223_v62 = vsel %vm221_vm0, %v213_v24, 0 }
  0x36   : >> { %v459_v57 = vand.u32 4294901760, %v458_v21  ;;  %281 = vmatpush1.msra.mxu0 %v3020_v43  ;;  %442 = vmatpush1.msra.mxu1 %v441_v59  ;;  %v470_v17 = vsub.f32 %v3088_v50, %v4305_v28  ;;  %v3116_v49 = vsub.f32 %v4418_v13, %v3013_v41  ;;  %v3120_v16 = vand.u32 4294901760, %v223_v62 }
  0x37   : >> { %v465_v61 = vand.u32 4294901760, %v464_v25  ;;  %283 = vmatprep.subr.mxu0 %v3029_v45  ;;  %448 = vmatprep.subr.mxu1 %v447_v54  ;;  %v3124_v25 = vsub.f32 %v4420_v12, %v3020_v43  ;;  %v3128_v59 = vsub.f32 %v4419_v9, %v3029_v45  ;;  %v3134_v54 = vsub.f32 %v4417_v8, %v3036_v47 }
  0x38   : >> { %285 = vmatpush1.msra.mxu0 %v3036_v47  ;;  %454 = vmatpush1.msra.mxu1 %v453_v63  ;;  %v471_v24 = vand.u32 4294901760, %v470_v17  ;;  %v4310_v28 = vand.u32 4294901760, %v3116_v49  ;;  %v226_v21 = vsel %vm221_vm0, %v214_v58, 0  ;;  %v4430_v12 = vand.u32 4294901760, %v3106_v20 }
  0x39   : >> { %287 = vmatprep.subr.mxu0 %v3046_v51  ;;  %460 = vmatprep.subr.mxu1 %v459_v57  ;;  %v3142_v13 = vsub.f32 %v223_v62, %v3120_v16  ;;  %v4314_v63 = vand.u32 4294901760, %v3124_v25  ;;  %v3151_v8 = vand.u32 4294901760, %v226_v21 }
  0x3a   : >> { %v476_v9 = vsub.f32 %v3106_v20, %v4430_v12  ;;  %289 = vmatpush1.msra.mxu0 %v3056_v55  ;;  %466 = vmatpush1.msra.mxu1 %v465_v61  ;;  %v482_v58 = vsub.f32 %v3116_v49, %v4310_v28  ;;  %v3155_v12 = vsub.f32 %v4415_v5, %v3046_v51  ;;  %v4433_v28 = vand.u32 4294901760, %v3128_v59 }
  0x3b   : >> { %4431 = vst [vmem:[#allocation38_spill] sm:$0xff] %v3142_v13  ;;  %4432 = vst [vmem:[#allocation39_spill] sm:$0xff] %v3151_v8  ;;  %291 = vmatprep.subr.mxu0 %v3076_v60  ;;  %472 = vmatprep.subr.mxu1 %v471_v24  ;;  %v3159_v17 = vand.u32 4294901760, %v3142_v13  ;;  %v488_v61 = vsub.f32 %v3124_v25, %v4314_v63  ;;  %v4434_v24 = vand.u32 4294901760, %v3134_v54 }
  0x3c   : >> { %v477_v62 = vand.u32 4294901760, %v476_v9  ;;  %v494_v57 = vsub.f32 %v3128_v59, %v4433_v28  ;;  %293 = vmatpush1.msra.mxu0 %v3095_v53  ;;  %v483_v5 = vand.u32 4294901760, %v482_v58  ;;  %v3173_v32 = vsub.f32 %v226_v21, %v3151_v8 }
  0x3d   : >> { %v500_v9 = vsub.f32 %v3134_v54, %v4434_v24  ;;  %v4321_v63 = vand.u32 4294901760, %v3155_v12  ;;  %v330_v28 = vsub.f32 %v3142_v13, %v3159_v17  ;;  %v489_v3 = vand.u32 4294901760, %v488_v61  ;;  %634 = vmatprep.subr.mxu0 %v3017_v42 }
  0x3e   : >> { %478 = vmatpush1.msra.mxu1 %v477_v62  ;;  %v495_v6 = vand.u32 4294901760, %v494_v57  ;;  %v3181_v58 = vsub.f32 %v4414_v4, %v3056_v55  ;;  %v3185_v21 = vand.u32 4294901760, %v3173_v32  ;;  %v3192_v61 = vsub.f32 %v4413_v1, %v3076_v60  ;;  %v216_v57 = vld [vmem:[%s3065_s17 + $0x18] sm:$0xff]  ;;  %v217_v4 = vld [vmem:[%s3065_s17 + $0x20] sm:$0xff] }
  0x3f   : >> { %484 = vmatprep.subr.mxu1 %v483_v5  ;;  %v501_v24 = vand.u32 4294901760, %v500_v9  ;;  %v506_v62 = vsub.f32 %v3155_v12, %v4321_v63  ;;  %v3197_v7 = vand.u32 4294901760, %v330_v28  ;;  %v3202_v9 = vsub.f32 %v4412_v0, %v3095_v53 }
  0x40   : >> { %490 = vmatpush1.msra.mxu1 %v489_v3  ;;  %v4330_v5 = vand.u32 4294901760, %v3181_v58  ;;  %v341_v63 = vsub.f32 %v3173_v32, %v3185_v21  ;;  %v3208_v28 = vand.u32 4294901760, %v229_v10  ;;  %v218_v3 = vld [vmem:[%s3065_s17 + $0x28] sm:$0xff]  ;;  %v4438_v14 = vand.u32 4294901760, %v3192_v61 }
  0x41   : >> { %4435 = vst [vmem:[#allocation40_spill] sm:$0xff] %v3197_v7  ;;  %496 = vmatprep.subr.mxu1 %v495_v6  ;;  %v507_v1 = vand.u32 4294901760, %v506_v62  ;;  %332 = vmatmul.mubr.f32.vlgmr.msra.gmra.mxu0 %v3197_v7  ;;  %v232_v6 = vsel %vm221_vm0, %v216_v57, 0  ;;  %v235_v62 = vsel %vm221_vm0, %v217_v4, 0  ;;  %v4439_v57 = vand.u32 4294901760, %v3202_v9 }
  0x42   : >> { %502 = vmatpush1.msra.mxu1 %v501_v24  ;;  %v512_v0 = vsub.f32 %v3181_v58, %v4330_v5  ;;  %337 = vmatprep.mubr.f32.mxu0 %v4436_v11  ;;  %v3219_v29 = vand.u32 4294901760, %v341_v63  ;;  %v518_v7 = vsub.f32 %v3192_v61, %v4438_v14  ;;  %v3225_v24 = vsub.f32 %v229_v10, %v3208_v28  ;;  %v219_v5 = vld [vmem:[%s3065_s17 + $0x30] sm:$0xff] }
  0x43   : >> { %508 = vmatprep.subr.mxu1 %v507_v1  ;;  %v3227_v15 = vand.u32 4294901760, %v232_v6  ;;  %v524_v4 = vsub.f32 %v3202_v9, %v4439_v57  ;;  %637 = vmatpush1.msra.mxu0 %v3024_v44  ;;  %v3235_v63 = vand.u32 4294901760, %v235_v62  ;;  %v238_v1 = vsel %vm221_vm0, %v218_v3, 0 }
  0x44   : >> { %4437 = vst [vmem:[#allocation41_spill] sm:$0xff] %v3219_v29  ;;  %v513_v18 = vand.u32 4294901760, %v512_v0  ;;  %v519_v19 = vand.u32 4294901760, %v518_v7  ;;  %v3239_v14 = vand.u32 4294901760, %v3225_v24  ;;  %640 = vmatprep.subr.mxu0 %v3033_v46  ;;  %v3245_v0 = vand.u32 4294901760, %v238_v1 }
  0x45   : >> { %v3243_v10 = vsub.f32 %v232_v6, %v3227_v15  ;;  %343 = vmatmul.mubr.f32.gmra.mxu0 %v3219_v29  ;;  %v525_v57 = vand.u32 4294901760, %v524_v4  ;;  %v3249_v22 = vsub.f32 %v235_v62, %v3235_v63  ;;  %v241_v3 = vsel %vm221_vm0, %v219_v5, 0 }
  0x46   : >> { %514 = vmatpush1.msra.mxu1 %v513_v18  ;;  %v244_v7 = vsel %vm221_vm0, %v220_v2, 0  ;;  %348 = vmatprep.mubr.f32.mxu0 %v4436_v11  ;;  %v352_v6 = vsub.f32 %v3225_v24, %v3239_v14  ;;  %v3260_v29 = vsub.f32 %v238_v1, %v3245_v0  ;;  %v3262_v18 = vand.u32 4294901760, %v241_v3 }
  0x47   : >> { %520 = vmatprep.subr.mxu1 %v519_v19  ;;  %v3257_v23 = vand.u32 4294901760, %v3243_v10  ;;  %643 = vmatpush1.msra.mxu0 %v3040_v48  ;;  %v3266_v5 = vand.u32 4294901760, %v3249_v22  ;;  %v3276_v62 = vand.u32 4294901760, %v244_v7 }
  0x48   : >> { %526 = vmatpush1.msra.mxu1 %v525_v57  ;;  %v3268_v19 = vand.u32 4294901760, %v352_v6  ;;  %v3285_v57 = vand.u32 4294901760, %v3260_v29  ;;  %v3288_v6 = vsub.f32 %v241_v3, %v3262_v18  ;;  %646 = vmatprep.subr.mxu0 %v3050_v52 }
  0x49   : >> { %561 = vmatmul.mubr.f32.vlgmr.msra.gmra.mxu1 %v3120_v16  ;;  %794 = vmatprep.subr.mxu1 %v2988_v33  ;;  %v363_v2 = vsub.f32 %v3243_v10, %v3257_v23  ;;  %v374_v1 = vsub.f32 %v3249_v22, %v3266_v5 }
  0x4a   : >> { %4440 = vst [vmem:[#allocation42_spill] sm:$0xff] %v3268_v19  ;;  %796 = vmatpush1.msra.mxu1 %v2991_v34  ;;  %566 = vmatprep.mubr.f32.mxu1 %v4436_v11  ;;  %v385_v3 = vsub.f32 %v3260_v29, %v3285_v57 }
  0x4b   : >> { %354 = vmatmul.mubr.f32.gmra.mxu0 %v3268_v19  ;;  %v3279_v4 = vand.u32 4294901760, %v363_v2  ;;  %798 = vmatprep.subr.mxu1 %v2994_v35  ;;  %v3297_v2 = vand.u32 4294901760, %v374_v1  ;;  %v3303_v19 = vand.u32 4294901760, %v3288_v6 }
  0x4c   : >> { %359 = vmatprep.mubr.f32.mxu0 %v4436_v11  ;;  %800 = vmatpush1.msra.mxu1 %v2997_v36  ;;  %v3315_v1 = vand.u32 4294901760, %v385_v3 }
  0x4d   : >> { %4441 = vst [vmem:[#allocation43_spill] sm:$0xff] %v3279_v4  ;;  %568 = vmatmul.mubr.f32.gmra.mxu1 %v3151_v8  ;;  %649 = vmatpush1.msra.mxu0 %v3060_v56  ;;  %4442 = vst [vmem:[#allocation44_spill] sm:$0xff] %v3297_v2  ;;  %v3306_v8 = vsub.f32 %v244_v7, %v3276_v62  ;;  %v396_v7 = vsub.f32 %v3288_v6, %v3303_v19 }
  0x4e   : >> { %573 = vmatprep.mubr.f32.mxu1 %v4436_v11  ;;  %802 = vmatprep.subr.mxu1 %v3000_v37  ;;  %4443 = vst [vmem:[#allocation45_spill] sm:$0xff] %v3303_v19 }
  0x4f   : >> { %365 = vmatmul.mubr.f32.gmra.mxu0 %v3279_v4  ;;  %4444 = vst [vmem:[#allocation46_spill] sm:$0xff] %v3306_v8  ;;  %804 = vmatpush1.msra.mxu1 %v3003_v38  ;;  %v3321_v4 = vand.u32 4294901760, %v3306_v8  ;;  %v3330_v3 = vand.u32 4294901760, %v396_v7 }
  0x50   : >> { %370 = vmatprep.mubr.f32.mxu0 %v4436_v11  ;;  %652 = vmatprep.subr.mxu0 %v3088_v50 }
  0x51   : >> { %575 = vmatmul.mubr.f32.gmra.mxu1 %v3208_v28  ;;  %655 = vmatpush1.msra.mxu0 %v3106_v20  ;;  %4445 = vst [vmem:[#allocation47_spill] sm:$0xff] %v3321_v4  ;;  %4446 = vst [vmem:[#allocation48_spill] sm:$0xff] %v3330_v3 }
  0x52   : >> { %580 = vmatprep.mubr.f32.mxu1 %v4436_v11  ;;  %806 = vmatprep.subr.mxu1 %v3006_v39 }
  0x53   : >> { %376 = vmatmul.mubr.f32.gmra.mxu0 %v3297_v2  ;;  %808 = vmatpush1.msra.mxu1 %v3009_v40  ;;  %v407_v2 = vsub.f32 %v3306_v8, %v3321_v4 }
  0x54   : >> { %381 = vmatprep.mubr.f32.mxu0 %v4436_v11  ;;  %658 = vmatprep.subr.mxu0 %v3116_v49 }
  0x55   : >> { %582 = vmatmul.mubr.f32.gmra.mxu1 %v3227_v15  ;;  %661 = vmatpush1.msra.mxu0 %v3124_v25  ;;  %v3342_v7 = vand.u32 4294901760, %v407_v2  ;;  %v4448_v2 = vand.u32 4294901760, %v3017_v42  ;;  %v3413_v42 = vand.u32 4294901760, %v4409_v30 }
  0x56   : >> { %587 = vmatprep.mubr.f32.mxu1 %v4436_v11  ;;  %810 = vmatprep.subr.mxu1 %v3013_v41 }
  0x57   : >> { %387 = vmatmul.mubr.f32.gmra.mxu0 %v3315_v1  ;;  %812 = vmatpush1.msra.mxu1 %v3020_v43  ;;  %4447 = vst [vmem:[#allocation49_spill] sm:$0xff] %v3342_v7 }
  0x58   : >> { %392 = vmatprep.mubr.f32.mxu0 %v4436_v11  ;;  %664 = vmatprep.subr.mxu0 %v3128_v59 }
  0x59   : >> { %589 = vmatmul.mubr.f32.gmra.mxu1 %v3235_v63  ;;  %667 = vmatpush1.msra.mxu0 %v3134_v54 }
  0x5a   : >> { %594 = vmatprep.mubr.f32.mxu1 %v4436_v11  ;;  %670 = vmatprep.subr.mxu0 %v3155_v12 }
  0x5b   : >> { %398 = vmatmul.mubr.f32.gmra.mxu0 %v3330_v3  ;;  %814 = vmatprep.subr.mxu1 %v3029_v45  ;;  %v4451_v3 = vand.u32 4294901760, %v3040_v48  ;;  %v4459_v48 = vand.u32 4294901760, %v3134_v54  ;;  %v4463_v54 = vand.u32 4294901760, %v3181_v58 }
  0x5c   : >> { %403 = vmatprep.mubr.f32.mxu0 %v4436_v11  ;;  %673 = vmatpush1.msra.mxu0 %v3181_v58 }
  0x5d   : >> { %596 = vmatmul.mubr.f32.gmra.mxu1 %v3245_v0  ;;  %676 = vmatprep.subr.mxu0 %v3192_v61 }
  0x5e   : >> { %816 = vmatpush1.msra.mxu1 %v3036_v47  ;;  %601 = vmatprep.mubr.f32.mxu1 %v4436_v11 }
  0x5f   : >> { %409 = vmatmul.mubr.f32.gmra.mxu0 %v3342_v7  ;;  %818 = vmatprep.subr.mxu1 %v3046_v51  ;;  %v4449_v7 = vand.u32 4294901760, %v3024_v44  ;;  %v3420_v44 = vand.u32 4294901760, %v4410_v27 }
  0x60   : >> { %679 = vmatpush1.msra.mxu0 %v3202_v9  ;;  %712 = vmatprep.mubr.f32.mxu0 %v4436_v11 }
  0x61   : >> { %603 = vmatmul.mubr.f32.gmra.mxu1 %v3262_v18  ;;  %949 = vmatprep.subr.mxu0 %v4448_v2 }
  0x62   : >> { %820 = vmatpush1.msra.mxu1 %v3056_v55  ;;  %608 = vmatprep.mubr.f32.mxu1 %v4436_v11 }
  0x63   : >> { %715 = vmatmul.mubr.f32.vlgmr.msra.gmra.mxu0 %v3142_v13  ;;  %822 = vmatprep.subr.mxu1 %v3076_v60  ;;  %v4450_v13 = vand.u32 4294901760, %v3033_v46  ;;  %v4458_v46 = vand.u32 4294901760, %v3128_v59 }
  0x64   : >> { %720 = vmatprep.mubr.f32.mxu0 %v4436_v11  ;;  %824 = vmatpush1.msra.mxu1 %v3095_v53 }
  0x65   : >> { %610 = vmatmul.mubr.f32.gmra.mxu1 %v3276_v62  ;;  %953 = vmatpush1.msra.mxu0 %v4449_v7 }
  0x66   : >> { %857 = vmatprep.mubr.f32.mxu1 %v4436_v11  ;;  %1116 = vmatprep.subr.mxu1 %v2988_v33  ;;  %v4453_v33 = vand.u32 4294901760, %v3060_v56 }
  0x67   : >> { %723 = vmatmul.mubr.f32.gmra.mxu0 %v3173_v32  ;;  %957 = vmatprep.subr.mxu0 %v4450_v13  ;;  %v4452_v13 = vand.u32 4294901760, %v3050_v52  ;;  %v3442_v52 = vsub.f32 %v4410_v27, %v3420_v44 }
  0x68   : >> { %728 = vmatprep.mubr.f32.mxu0 %v4436_v11  ;;  %961 = vmatpush1.msra.mxu0 %v4451_v3 }
  0x69   : >> { %861 = vmatmul.mubr.f32.vlgmr.msra.gmra.mxu1 %v3159_v17  ;;  %965 = vmatprep.subr.mxu0 %v4452_v13  ;;  %v4466_v13 = vand.u32 4294901760, %v3202_v9 }
  0x6a   : >> { %1118 = vmatpush1.msra.mxu1 %v2991_v34  ;;  %866 = vmatprep.mubr.f32.mxu1 %v4436_v11  ;;  %v4454_v34 = vand.u32 4294901760, %v3088_v50 }
  0x6b   : >> { %731 = vmatmul.mubr.f32.gmra.mxu0 %v3225_v24  ;;  %1120 = vmatprep.subr.mxu1 %v2994_v35  ;;  %v4455_v35 = vand.u32 4294901760, %v3106_v20  ;;  %v4461_v20 = vld [vmem:[#allocation28_spill] sm:$0xff] }
  0x6c   : >> { %736 = vmatprep.mubr.f32.mxu0 %v4436_v11  ;;  %1122 = vmatpush1.msra.mxu1 %v2997_v36  ;;  %v3400_v36 = vand.u32 4294901760, %v4408_v31 }
  0x6d   : >> { %870 = vmatmul.mubr.f32.gmra.mxu1 %v3185_v21  ;;  %969 = vmatpush1.msra.mxu0 %v4453_v33 }
  0x6e   : >> { %875 = vmatprep.mubr.f32.mxu1 %v4436_v11  ;;  %1124 = vmatprep.subr.mxu1 %v3000_v37  ;;  %v4456_v37 = vand.u32 4294901760, %v3116_v49  ;;  %v3452_v49 = vand.u32 4294901760, %v4461_v20 }
  0x6f   : >> { %739 = vmatmul.mubr.f32.gmra.mxu0 %v3243_v10  ;;  %1126 = vmatpush1.msra.mxu1 %v3003_v38  ;;  %v4457_v38 = vand.u32 4294901760, %v3124_v25  ;;  %v4462_v25 = vld [vmem:[#allocation27_spill] sm:$0xff] }
  0x70   : >> { %744 = vmatprep.mubr.f32.mxu0 %v4436_v11  ;;  %973 = vmatprep.subr.mxu0 %v4454_v34  ;;  %v3457_v59 = vand.u32 4294901760, %v4462_v25  ;;  %v4467_v34 = vld [vmem:[#allocation23_spill] sm:$0xff] }
  0x71   : >> { %879 = vmatmul.mubr.f32.gmra.mxu1 %v3239_v14  ;;  %977 = vmatpush1.msra.mxu0 %v4455_v35  ;;  %v3488_v35 = vand.u32 4294901760, %v4467_v34 }
  0x72   : >> { %884 = vmatprep.mubr.f32.mxu1 %v4436_v11  ;;  %1128 = vmatprep.subr.mxu1 %v3006_v39  ;;  %v3417_v39 = vsub.f32 %v4408_v31, %v3400_v36  ;;  %v3485_v33 = vsub.f32 %v4462_v25, %v3457_v59 }
  0x73   : >> { %747 = vmatmul.mubr.f32.gmra.mxu0 %v3249_v22  ;;  %1130 = vmatpush1.msra.mxu1 %v3009_v40  ;;  %v3425_v40 = vand.u32 4294901760, %v4411_v26 }
  0x74   : >> { %752 = vmatprep.mubr.f32.mxu0 %v4436_v11  ;;  %981 = vmatprep.subr.mxu0 %v4456_v37  ;;  %v4347_v50 = vand.u32 4294901760, %v3417_v39 }
  0x75   : >> { %888 = vmatmul.mubr.f32.gmra.mxu1 %v3257_v23  ;;  %985 = vmatpush1.msra.mxu0 %v4457_v38  ;;  %v3449_v56 = vsub.f32 %v4411_v26, %v3425_v40 }
  0x76   : >> { %893 = vmatprep.mubr.f32.mxu1 %v4436_v11  ;;  %1132 = vmatprep.subr.mxu1 %v3013_v41  ;;  %v3438_v41 = vsub.f32 %v4409_v30, %v3413_v42  ;;  %v1424_v3 = vsub.f32 %v3417_v39, %v4347_v50 }
  0x77   : >> { %755 = vmatmul.mubr.f32.gmra.mxu0 %v3260_v29  ;;  %1134 = vmatpush1.msra.mxu1 %v3020_v43  ;;  %v4460_v43 = vand.u32 4294901760, %v3155_v12  ;;  %v4464_v12 = vand.u32 4294901760, %v3192_v61  ;;  %v4344_v58 = vand.u32 4294901760, %v3449_v56  ;;  %v4465_v61 = vld [vmem:[#allocation24_spill] sm:$0xff] }
  0x78   : >> { %760 = vmatprep.mubr.f32.mxu0 %v4436_v11  ;;  %989 = vmatprep.subr.mxu0 %v4458_v46  ;;  %v4346_v7 = vand.u32 4294901760, %v3438_v41  ;;  %v3478_v2 = vand.u32 4294901760, %v4465_v61  ;;  %v1425_v37 = vand.u32 4294901760, %v1424_v3 }
  0x79   : >> { %897 = vmatmul.mubr.f32.gmra.mxu1 %v3266_v5  ;;  %993 = vmatpush1.msra.mxu0 %v4459_v48  ;;  %v4468_v48 = vld [vmem:[#allocation20_spill] sm:$0xff] }
  0x7a   : >> { %902 = vmatprep.mubr.f32.mxu1 %v4436_v11  ;;  %997 = vmatprep.subr.mxu0 %v4460_v43  ;;  %v1430_v9 = vsub.f32 %v3438_v41, %v4346_v7  ;;  %v3508_v46 = vsub.f32 %v4465_v61, %v3478_v2  ;;  %v3511_v43 = vand.u32 4294901760, %v4468_v48 }
  0x7b   : >> { %763 = vmatmul.mubr.f32.gmra.mxu0 %v3288_v6  ;;  %1136 = vmatprep.subr.mxu1 %v3029_v45  ;;  %v4345_v45 = vand.u32 4294901760, %v3442_v52 }
  0x7c   : >> { %768 = vmatprep.mubr.f32.mxu0 %v4436_v11  ;;  %1001 = vmatpush1.msra.mxu0 %v4463_v54  ;;  %v3534_v54 = vsub.f32 %v4468_v48, %v3511_v43  ;;  %v4478_v48 = vld [vmem:[#allocation8_spill] sm:$0xff] }
  0x7d   : >> { %906 = vmatmul.mubr.f32.gmra.mxu1 %v3285_v57  ;;  %1005 = vmatprep.subr.mxu0 %v4464_v12  ;;  %v1436_v38 = vsub.f32 %v3442_v52, %v4345_v45  ;;  %v4469_v12 = vld [vmem:[#allocation19_spill] sm:$0xff] }
  0x7e   : >> { %1138 = vmatpush1.msra.mxu1 %v3036_v47  ;;  %911 = vmatprep.mubr.f32.mxu1 %v4436_v11  ;;  %v3475_v47 = vsub.f32 %v4461_v20, %v3452_v49  ;;  %v3521_v3 = vand.u32 4294901760, %v4469_v12  ;;  %v4473_v20 = vld [vmem:[#allocation15_spill] sm:$0xff]  ;;  %v4364_v26 = vand.u32 4294901760, %v3534_v54 }
  0x7f   : >> { %771 = vmatmul.mubr.f32.gmra.mxu0 %v3306_v8  ;;  %1140 = vmatprep.subr.mxu1 %v3046_v51  ;;  %v1442_v51 = vsub.f32 %v3449_v56, %v4344_v58  ;;  %v1437_v58 = vand.u32 4294901760, %v1436_v38  ;;  %v3553_v25 = vand.u32 4294901760, %v4473_v20  ;;  %v4480_v8 = vld [vmem:[#allocation7_spill] sm:$0xff] }
  0x80   : >> { %1009 = vmatpush1.msra.mxu0 %v4466_v13  ;;  %1042 = vmatprep.mubr.f32.mxu0 %v4436_v11  ;;  %v1431_v13 = vand.u32 4294901760, %v1430_v9  ;;  %v4471_v9 = vand.u32 4294901760, %v3485_v33 }
  0x81   : >> { %915 = vmatmul.mubr.f32.gmra.mxu1 %v3303_v19  ;;  %1253 = vmatprep.subr.mxu0 %v3400_v36  ;;  %v1443_v45 = vand.u32 4294901760, %v1442_v51  ;;  %v3544_v51 = vsub.f32 %v4469_v12, %v3521_v3 }
  0x82   : >> { %1142 = vmatpush1.msra.mxu1 %v3056_v55  ;;  %920 = vmatprep.mubr.f32.mxu1 %v4436_v11  ;;  %v4348_v55 = vand.u32 4294901760, %v3475_v47  ;;  %v1454_v38 = vsub.f32 %v3485_v33, %v4471_v9 }
  0x83   : >> { %1044 = vmatmul.mubr.f32.vlgmr.msra.gmra.mxu0 %v3120_v16  ;;  %1144 = vmatprep.subr.mxu1 %v3076_v60  ;;  %v3518_v60 = vsub.f32 %v4467_v34, %v3488_v35  ;;  %v1472_v34 = vsub.f32 %v3534_v54, %v4364_v26 }
  0x84   : >> { %1049 = vmatprep.mubr.f32.mxu0 %v4436_v11  ;;  %1146 = vmatpush1.msra.mxu1 %v3095_v53  ;;  %v4470_v53 = vld [vmem:[#allocation39_spill] sm:$0xff]  ;;  %v1448_v7 = vsub.f32 %v3475_v47, %v4348_v55  ;;  %v4472_v55 = vld [vmem:[#allocation16_spill] sm:$0xff]  ;;  %v1455_v27 = vand.u32 4294901760, %v1454_v38 }
  0x85   : >> { %924 = vmatmul.mubr.f32.gmra.mxu1 %v3321_v4  ;;  %1255 = vmatpush1.msra.mxu0 %v3413_v42  ;;  %v3547_v50 = vand.u32 4294901760, %v4472_v55  ;;  %v4479_v4 = vand.u32 4294901760, %v3544_v51 }
  0x86   : >> { %1179 = vmatprep.mubr.f32.mxu1 %v4436_v11  ;;  %1426 = vmatprep.subr.mxu1 %v1425_v37  ;;  %v1449_v9 = vand.u32 4294901760, %v1448_v7  ;;  %v4474_v37 = vand.u32 4294901760, %v3508_v46  ;;  %v4476_v7 = vld [vmem:[#allocation12_spill] sm:$0xff] }
  0x87   : >> { %1051 = vmatmul.mubr.f32.gmra.mxu0 %v4470_v53  ;;  %1257 = vmatprep.subr.mxu0 %v3420_v44 }
  0x88   : >> { %1056 = vmatprep.mubr.f32.mxu0 %v4436_v11  ;;  %1259 = vmatpush1.msra.mxu0 %v3425_v40  ;;  %v1460_v12 = vsub.f32 %v3508_v46, %v4474_v37  ;;  %v3572_v37 = vand.u32 4294901760, %v4476_v7 }
  0x89   : >> { %1181 = vmatmul.mubr.f32.vlgmr.msra.gmra.mxu1 %v3120_v16  ;;  %1261 = vmatprep.subr.mxu0 %v3452_v49 }
  0x8a   : >> { %1432 = vmatpush1.msra.mxu1 %v1431_v13  ;;  %1186 = vmatprep.mubr.f32.mxu1 %v4436_v11  ;;  %v4475_v13 = vand.u32 4294901760, %v3518_v60  ;;  %v1461_v31 = vand.u32 4294901760, %v1460_v12  ;;  %v3602_v12 = vsub.f32 %v4476_v7, %v3572_v37 }
  0x8b   : >> { %1058 = vmatmul.mubr.f32.gmra.mxu0 %v3208_v28  ;;  %1438 = vmatprep.subr.mxu1 %v1437_v58  ;;  %v3567_v58 = vsub.f32 %v4472_v55, %v3547_v50  ;;  %v3588_v55 = vand.u32 4294901760, %v4478_v48 }
  0x8c   : >> { %1063 = vmatprep.mubr.f32.mxu0 %v4436_v11  ;;  %1444 = vmatpush1.msra.mxu1 %v1443_v45  ;;  %v1466_v30 = vsub.f32 %v3518_v60, %v4475_v13  ;;  %v4477_v45 = vld [vmem:[#allocation11_spill] sm:$0xff]  ;;  %v3581_v13 = vsub.f32 %v4473_v20, %v3553_v25  ;;  %v1478_v20 = vsub.f32 %v3544_v51, %v4479_v4  ;;  %v1473_v4 = vand.u32 4294901760, %v1472_v34 }
  0x8d   : >> { %1188 = vmatmul.mubr.f32.gmra.mxu1 %v4470_v53  ;;  %1263 = vmatpush1.msra.mxu0 %v3457_v59  ;;  %v3577_v38 = vand.u32 4294901760, %v4477_v45  ;;  %v3614_v26 = vsub.f32 %v4478_v48, %v3588_v55  ;;  %v4481_v7 = vand.u32 4294901760, %v3567_v58  ;;  %v4483_v48 = vand.u32 4294901760, %v3602_v12 }
  0x8e   : >> { %1193 = vmatprep.mubr.f32.mxu1 %v4436_v11  ;;  %1450 = vmatprep.subr.mxu1 %v1449_v9  ;;  %v1467_v61 = vand.u32 4294901760, %v1466_v30  ;;  %v3596_v9 = vand.u32 4294901760, %v4480_v8  ;;  %v1479_v19 = vand.u32 4294901760, %v1478_v20  ;;  %v4482_v20 = vand.u32 4294901760, %v3581_v13 }
  0x8f   : >> { %1065 = vmatmul.mubr.f32.gmra.mxu0 %v3227_v15  ;;  %1456 = vmatpush1.msra.mxu1 %v1455_v27  ;;  %v3609_v30 = vsub.f32 %v4477_v45, %v3577_v38  ;;  %v1484_v27 = vsub.f32 %v3567_v58, %v4481_v7  ;;  %v4370_v7 = vand.u32 4294901760, %v3614_v26 }
  0x90   : >> { %1070 = vmatprep.mubr.f32.mxu0 %v4436_v11  ;;  %1265 = vmatprep.subr.mxu0 %v3478_v2  ;;  %v3622_v45 = vsub.f32 %v4480_v8, %v3596_v9 }
  0x91   : >> { %1195 = vmatmul.mubr.f32.gmra.mxu1 %v3208_v28  ;;  %1267 = vmatpush1.msra.mxu0 %v3488_v35  ;;  %v4369_v34 = vand.u32 4294901760, %v3609_v30  ;;  %v1485_v8 = vand.u32 4294901760, %v1484_v27  ;;  %v1508_v27 = vsub.f32 %v3614_v26, %v4370_v7 }
  0x92   : >> { %1200 = vmatprep.mubr.f32.mxu1 %v4436_v11  ;;  %1462 = vmatprep.subr.mxu1 %v1461_v31  ;;  %v1513_v31 = vand.u32 4294901760, %v3622_v45 }
  0x93   : >> { %1072 = vmatmul.mubr.f32.gmra.mxu0 %v3235_v63  ;;  %1468 = vmatpush1.msra.mxu1 %v1467_v61  ;;  %v1490_v61 = vsub.f32 %v3581_v13, %v4482_v20  ;;  %v1496_v20 = vsub.f32 %v3602_v12, %v4483_v48  ;;  %v1509_v7 = vand.u32 4294901760, %v1508_v27  ;;  %v4489_v27 = vld [vmem:[#allocation48_spill] sm:$0xff] }
  0x94   : >> { %1077 = vmatprep.mubr.f32.mxu0 %v4436_v11  ;;  %1269 = vmatprep.subr.mxu0 %v3511_v43  ;;  %v1514_v48 = vsub.f32 %v3622_v45, %v1513_v31 }
  0x95   : >> { %1202 = vmatmul.mubr.f32.gmra.mxu1 %v3227_v15  ;;  %1271 = vmatpush1.msra.mxu0 %v3521_v3 }
  0x96   : >> { %1207 = vmatprep.mubr.f32.mxu1 %v4436_v11  ;;  %1474 = vmatprep.subr.mxu1 %v1473_v4  ;;  %v1491_v4 = vand.u32 4294901760, %v1490_v61  ;;  %v1497_v61 = vand.u32 4294901760, %v1496_v20  ;;  %v4484_v20 = vld [vmem:[#allocation40_spill] sm:$0xff] }
  0x97   : >> { %1079 = vmatmul.mubr.f32.gmra.mxu0 %v3245_v0  ;;  %1480 = vmatpush1.msra.mxu1 %v1479_v19  ;;  %v1502_v19 = vsub.f32 %v3609_v30, %v4369_v34 }
  0x98   : >> { %1084 = vmatprep.mubr.f32.mxu0 %v4436_v11  ;;  %1273 = vmatprep.subr.mxu0 %v3547_v50 }
  0x99   : >> { %1209 = vmatmul.mubr.f32.gmra.mxu1 %v3235_v63  ;;  %1275 = vmatpush1.msra.mxu0 %v3553_v25  ;;  %v1503_v34 = vand.u32 4294901760, %v1502_v19  ;;  %v4488_v19 = vld [vmem:[#allocation44_spill] sm:$0xff] }
  0x9a   : >> { %1214 = vmatprep.mubr.f32.mxu1 %v4436_v11  ;;  %1277 = vmatprep.subr.mxu0 %v3572_v37 }
  0x9b   : >> { %1086 = vmatmul.mubr.f32.gmra.mxu0 %v3262_v18  ;;  %1486 = vmatprep.subr.mxu1 %v1485_v8  ;;  %v1515_v8 = vand.u32 4294901760, %v1514_v48  ;;  %v4491_v48 = vld [vmem:[#allocation38_spill] sm:$0xff] }
  0x9c   : >> { %1091 = vmatprep.mubr.f32.mxu0 %v4436_v11  ;;  %1279 = vmatpush1.msra.mxu0 %v3577_v38 }
  0x9d   : >> { %1216 = vmatmul.mubr.f32.gmra.mxu1 %v3245_v0  ;;  %1281 = vmatprep.subr.mxu0 %v3588_v55 }
  0x9e   : >> { %1492 = vmatpush1.msra.mxu1 %v1491_v4  ;;  %1221 = vmatprep.mubr.f32.mxu1 %v4436_v11  ;;  %v4485_v4 = vld [vmem:[#allocation41_spill] sm:$0xff] }
  0x9f   : >> { %1093 = vmatmul.mubr.f32.gmra.mxu0 %v3276_v62  ;;  %1498 = vmatprep.subr.mxu1 %v1497_v61  ;;  %v4492_v61 = vand.u32 4294901760, %v3417_v39 }
  0xa0   : >> { %1283 = vmatpush1.msra.mxu0 %v3596_v9  ;;  %1316 = vmatprep.mubr.f32.mxu0 %v4436_v11 }
  0xa1   : >> { %1223 = vmatmul.mubr.f32.gmra.mxu1 %v3262_v18  ;;  %1624 = vmatprep.subr.mxu0 %v3417_v39 }
  0xa2   : >> { %1504 = vmatpush1.msra.mxu1 %v1503_v34  ;;  %1228 = vmatprep.mubr.f32.mxu1 %v4436_v11  ;;  %v4486_v34 = vld [vmem:[#allocation42_spill] sm:$0xff] }
  0xa3   : >> { %1322 = vmatmul.mubr.f32.vlgmr.msra.gmra.mxu0 %v4484_v20  ;;  %1510 = vmatprep.subr.mxu1 %v1509_v7  ;;  %v4487_v7 = vld [vmem:[#allocation43_spill] sm:$0xff]  ;;  %v4494_v20 = vand.u32 4294901760, %v3442_v52 }
  0xa4   : >> { %1327 = vmatprep.mubr.f32.mxu0 %v4436_v11  ;;  %1516 = vmatpush1.msra.mxu1 %v1515_v8  ;;  %v4493_v8 = vand.u32 4294901760, %v3438_v41 }
  0xa5   : >> { %1230 = vmatmul.mubr.f32.gmra.mxu1 %v3276_v62  ;;  %1627 = vmatpush1.msra.mxu0 %v3438_v41 }
  0xa6   : >> { %1549 = vmatprep.mubr.f32.mxu1 %v4436_v11  ;;  %1784 = vmatprep.subr.mxu1 %v3400_v36 }
  0xa7   : >> { %1333 = vmatmul.mubr.f32.gmra.mxu0 %v4485_v4  ;;  %1630 = vmatprep.subr.mxu0 %v3442_v52  ;;  %v4495_v4 = vand.u32 4294901760, %v3449_v56 }
  0xa8   : >> { %1338 = vmatprep.mubr.f32.mxu0 %v4436_v11  ;;  %1633 = vmatpush1.msra.mxu0 %v3449_v56 }
  0xa9   : >> { %1551 = vmatmul.mubr.f32.vlgmr.msra.gmra.mxu1 %v3120_v16  ;;  %1636 = vmatprep.subr.mxu0 %v3475_v47 }
  0xaa   : >> { %1786 = vmatpush1.msra.mxu1 %v3413_v42  ;;  %1556 = vmatprep.mubr.f32.mxu1 %v4436_v11 }
  0xab   : >> { %1344 = vmatmul.mubr.f32.gmra.mxu0 %v4486_v34  ;;  %1788 = vmatprep.subr.mxu1 %v3420_v44 }
  0xac   : >> { %1349 = vmatprep.mubr.f32.mxu0 %v4436_v11  ;;  %1790 = vmatpush1.msra.mxu1 %v3425_v40 }
  0xad   : >> { %1558 = vmatmul.mubr.f32.gmra.mxu1 %v4470_v53  ;;  %1639 = vmatpush1.msra.mxu0 %v3485_v33 }
  0xae   : >> { %1563 = vmatprep.mubr.f32.mxu1 %v4436_v11  ;;  %1792 = vmatprep.subr.mxu1 %v3452_v49 }
  0xaf   : >> { %1355 = vmatmul.mubr.f32.gmra.mxu0 %v4487_v7  ;;  %1794 = vmatpush1.msra.mxu1 %v3457_v59 }
  0xb0   : >> { %1360 = vmatprep.mubr.f32.mxu0 %v4436_v11  ;;  %1642 = vmatprep.subr.mxu0 %v3508_v46 }
  0xb1   : >> { %1565 = vmatmul.mubr.f32.gmra.mxu1 %v3208_v28  ;;  %1645 = vmatpush1.msra.mxu0 %v3518_v60 }
  0xb2   : >> { %1570 = vmatprep.mubr.f32.mxu1 %v4436_v11  ;;  %1796 = vmatprep.subr.mxu1 %v3478_v2 }
  0xb3   : >> { %1366 = vmatmul.mubr.f32.gmra.mxu0 %v4488_v19  ;;  %1798 = vmatpush1.msra.mxu1 %v3488_v35 }
  0xb4   : >> { %1371 = vmatprep.mubr.f32.mxu0 %v4436_v11  ;;  %1648 = vmatprep.subr.mxu0 %v3534_v54 }
  0xb5   : >> { %1572 = vmatmul.mubr.f32.gmra.mxu1 %v3227_v15  ;;  %1651 = vmatpush1.msra.mxu0 %v3544_v51 }
  0xb6   : >> { %1577 = vmatprep.mubr.f32.mxu1 %v4436_v11  ;;  %1800 = vmatprep.subr.mxu1 %v3511_v43 }
  0xb7   : >> { %1377 = vmatmul.mubr.f32.gmra.mxu0 %v3315_v1  ;;  %1802 = vmatpush1.msra.mxu1 %v3521_v3  ;;  %v4490_v1 = vld [vmem:[#allocation49_spill] sm:$0xff] }
  0xb8   : >> { %1382 = vmatprep.mubr.f32.mxu0 %v4436_v11  ;;  %1654 = vmatprep.subr.mxu0 %v3567_v58 }
  0xb9   : >> { %1579 = vmatmul.mubr.f32.gmra.mxu1 %v3235_v63  ;;  %1657 = vmatpush1.msra.mxu0 %v3581_v13 }
  0xba   : >> { %1584 = vmatprep.mubr.f32.mxu1 %v4436_v11  ;;  %1660 = vmatprep.subr.mxu0 %v3602_v12 }
  0xbb   : >> { %1388 = vmatmul.mubr.f32.gmra.mxu0 %v4489_v27  ;;  %1804 = vmatprep.subr.mxu1 %v3547_v50 }
  0xbc   : >> { %1393 = vmatprep.mubr.f32.mxu0 %v4436_v11  ;;  %1663 = vmatpush1.msra.mxu0 %v3609_v30 }
  0xbd   : >> { %1586 = vmatmul.mubr.f32.gmra.mxu1 %v3245_v0  ;;  %1666 = vmatprep.subr.mxu0 %v3614_v26 }
  0xbe   : >> { %1806 = vmatpush1.msra.mxu1 %v3553_v25  ;;  %1591 = vmatprep.mubr.f32.mxu1 %v4436_v11 }
  0xbf   : >> { %1399 = vmatmul.mubr.f32.gmra.mxu0 %v4490_v1  ;;  %1808 = vmatprep.subr.mxu1 %v3572_v37 }
  0xc0   : >> { %1669 = vmatpush1.msra.mxu0 %v3622_v45  ;;  %1702 = vmatprep.mubr.f32.mxu0 %v4436_v11 }
  0xc1   : >> { %1593 = vmatmul.mubr.f32.gmra.mxu1 %v3262_v18  ;;  %1939 = vmatprep.subr.mxu0 %v4492_v61 }
  0xc2   : >> { %1810 = vmatpush1.msra.mxu1 %v3577_v38  ;;  %1598 = vmatprep.mubr.f32.mxu1 %v4436_v11 }
  0xc3   : >> { %1705 = vmatmul.mubr.f32.vlgmr.msra.gmra.mxu0 %v4491_v48  ;;  %1812 = vmatprep.subr.mxu1 %v3588_v55 }
  0xc4   : >> { %1710 = vmatprep.mubr.f32.mxu0 %v4436_v11  ;;  %1814 = vmatpush1.msra.mxu1 %v3596_v9 }
  0xc5   : >> { %1600 = vmatmul.mubr.f32.gmra.mxu1 %v3276_v62  ;;  %1943 = vmatpush1.msra.mxu0 %v4493_v8 }
  0xc6   : >> { %1847 = vmatprep.mubr.f32.mxu1 %v4436_v11  ;;  %2106 = vmatprep.subr.mxu1 %v3400_v36  ;;  %v4506_v36 = vand.u32 4294901760, %v3614_v26  ;;  %v4509_v26 = vld [vmem:[#allocation47_spill] sm:$0xff] }
  0xc7   : >> { %1713 = vmatmul.mubr.f32.gmra.mxu0 %v3173_v32  ;;  %1947 = vmatprep.subr.mxu0 %v4494_v20  ;;  %v4496_v32 = vand.u32 4294901760, %v3475_v47 }
  0xc8   : >> { %1718 = vmatprep.mubr.f32.mxu0 %v4436_v11  ;;  %1951 = vmatpush1.msra.mxu0 %v4495_v4 }
  0xc9   : >> { %1851 = vmatmul.mubr.f32.vlgmr.msra.gmra.mxu1 %v3159_v17  ;;  %1955 = vmatprep.subr.mxu0 %v4496_v32  ;;  %v4497_v17 = vand.u32 4294901760, %v3485_v33 }
  0xca   : >> { %2108 = vmatpush1.msra.mxu1 %v3413_v42  ;;  %1856 = vmatprep.mubr.f32.mxu1 %v4436_v11  ;;  %v4507_v42 = vld [vmem:[#allocation46_spill] sm:$0xff] }
  0xcb   : >> { %1721 = vmatmul.mubr.f32.gmra.mxu0 %v3225_v24  ;;  %2110 = vmatprep.subr.mxu1 %v3420_v44  ;;  %v4499_v24 = vand.u32 4294901760, %v3518_v60 }
  0xcc   : >> { %1726 = vmatprep.mubr.f32.mxu0 %v4436_v11  ;;  %2112 = vmatpush1.msra.mxu1 %v3425_v40 }
  0xcd   : >> { %1860 = vmatmul.mubr.f32.gmra.mxu1 %v3185_v21  ;;  %1959 = vmatpush1.msra.mxu0 %v4497_v17  ;;  %v4498_v21 = vand.u32 4294901760, %v3508_v46 }
  0xce   : >> { %1865 = vmatprep.mubr.f32.mxu1 %v4436_v11  ;;  %2114 = vmatprep.subr.mxu1 %v3452_v49 }
  0xcf   : >> { %1729 = vmatmul.mubr.f32.gmra.mxu0 %v3243_v10  ;;  %2116 = vmatpush1.msra.mxu1 %v3457_v59  ;;  %v4501_v10 = vand.u32 4294901760, %v3544_v51 }
  0xd0   : >> { %1734 = vmatprep.mubr.f32.mxu0 %v4436_v11  ;;  %1963 = vmatprep.subr.mxu0 %v4498_v21 }
  0xd1   : >> { %1869 = vmatmul.mubr.f32.gmra.mxu1 %v3239_v14  ;;  %1967 = vmatpush1.msra.mxu0 %v4499_v24  ;;  %v4500_v14 = vand.u32 4294901760, %v3534_v54  ;;  %v2227_v24 = vlaneseq }
  0xd2   : >> { %1874 = vmatprep.mubr.f32.mxu1 %v4436_v11  ;;  %2118 = vmatprep.subr.mxu1 %v3478_v2 }
  0xd3   : >> { %1737 = vmatmul.mubr.f32.gmra.mxu0 %v3249_v22  ;;  %2120 = vmatpush1.msra.mxu1 %v3488_v35  ;;  %v4502_v22 = vand.u32 4294901760, %v3567_v58 }
  0xd4   : >> { %1742 = vmatprep.mubr.f32.mxu0 %v4436_v11  ;;  %1971 = vmatprep.subr.mxu0 %v4500_v14 }
  0xd5   : >> { %1878 = vmatmul.mubr.f32.gmra.mxu1 %v3257_v23  ;;  %1975 = vmatpush1.msra.mxu0 %v4501_v10  ;;  %v4503_v23 = vand.u32 4294901760, %v3581_v13 }
  0xd6   : >> { %1883 = vmatprep.mubr.f32.mxu1 %v4436_v11  ;;  %2122 = vmatprep.subr.mxu1 %v3511_v43 }
  0xd7   : >> { %1745 = vmatmul.mubr.f32.gmra.mxu0 %v3260_v29  ;;  %2124 = vmatpush1.msra.mxu1 %v3521_v3  ;;  %v4504_v29 = vand.u32 4294901760, %v3602_v12 }
  0xd8   : >> { %1750 = vmatprep.mubr.f32.mxu0 %v4436_v11  ;;  %1979 = vmatprep.subr.mxu0 %v4502_v22 }
  0xd9   : >> { %1887 = vmatmul.mubr.f32.gmra.mxu1 %v3266_v5  ;;  %1983 = vmatpush1.msra.mxu0 %v4503_v23  ;;  %v4505_v5 = vand.u32 4294901760, %v3609_v30 }
  0xda   : >> { %1892 = vmatprep.mubr.f32.mxu1 %v4436_v11  ;;  %1987 = vmatprep.subr.mxu0 %v4504_v29  ;;  %v3921_v29 = vshrl.u32 %v2227_v24, 7 }
  0xdb   : >> { %1753 = vmatmul.mubr.f32.gmra.mxu0 %v3288_v6  ;;  %2126 = vmatprep.subr.mxu1 %v3547_v50  ;;  %v4508_v6 = vld [vmem:[#allocation45_spill] sm:$0xff] }
  0xdc   : >> { %1758 = vmatprep.mubr.f32.mxu0 %v4436_v11  ;;  %1991 = vmatpush1.msra.mxu0 %v4505_v5  ;;  %4517 = vst [vmem:[#allocation49_spill] sm:$0xff] %v3921_v29 }
  0xdd   : >> { %1896 = vmatmul.mubr.f32.gmra.mxu1 %v3285_v57  ;;  %1995 = vmatprep.subr.mxu0 %v4506_v36 }
  0xde   : >> { %2128 = vmatpush1.msra.mxu1 %v3553_v25  ;;  %1901 = vmatprep.mubr.f32.mxu1 %v4436_v11 }
  0xdf   : >> { %1761 = vmatmul.mubr.f32.gmra.mxu0 %v4507_v42  ;;  %2130 = vmatprep.subr.mxu1 %v3572_v37 }
  0xe0   : >> { %1999 = vmatpush1.msra.mxu0 %v1513_v31  ;;  %2032 = vmatprep.mubr.f32.mxu0 %v4436_v11 }
  0xe1   : >> { %1905 = vmatmul.mubr.f32.gmra.mxu1 %v4508_v6 }
  0xe2   : >> { %2132 = vmatpush1.msra.mxu1 %v3577_v38  ;;  %1910 = vmatprep.mubr.f32.mxu1 %v4436_v11 }
  0xe3   : >> { %2034 = vmatmul.mubr.f32.vlgmr.msra.gmra.mxu0 %v3120_v16  ;;  %2134 = vmatprep.subr.mxu1 %v3588_v55 }
  0xe4   : >> { %2039 = vmatprep.mubr.f32.mxu0 %v4436_v11  ;;  %2136 = vmatpush1.msra.mxu1 %v3596_v9 }
  0xe5   : >> { %1914 = vmatmul.mubr.f32.gmra.mxu1 %v4509_v26  ;;  %v2229_v26 = vsub.s32 0, %v3921_v29 }
  0xe6   : >> { %2169 = vmatprep.mubr.f32.mxu1 %v4436_v11 }
  0xe7   : >> { %2041 = vmatmul.mubr.f32.gmra.mxu0 %v4470_v53 }
  0xe8   : >> { %2046 = vmatprep.mubr.f32.mxu0 %v4436_v11 }
  0xe9   : >> { %2171 = vmatmul.mubr.f32.vlgmr.msra.gmra.mxu1 %v3120_v16 }
  0xea   : >> { %2176 = vmatprep.mubr.f32.mxu1 %v4436_v11 }
  0xeb   : >> { %2048 = vmatmul.mubr.f32.gmra.mxu0 %v3208_v28 }
  0xec   : >> { %2053 = vmatprep.mubr.f32.mxu0 %v4436_v11 }
  0xed   : >> { %2178 = vmatmul.mubr.f32.gmra.mxu1 %v4470_v53 }
  0xee   : >> { %2183 = vmatprep.mubr.f32.mxu1 %v4436_v11 }
  0xef   : >> { %2055 = vmatmul.mubr.f32.gmra.mxu0 %v3227_v15 }
  0xf0   : >> { %2060 = vmatprep.mubr.f32.mxu0 %v4436_v11 }
  0xf1   : >> { %2185 = vmatmul.mubr.f32.gmra.mxu1 %v3208_v28 }
  0xf2   : >> { %2190 = vmatprep.mubr.f32.mxu1 %v4436_v11 }
  0xf3   : >> { %2062 = vmatmul.mubr.f32.gmra.mxu0 %v3235_v63 }
  0xf4   : >> { %2067 = vmatprep.mubr.f32.mxu0 %v4436_v11 }
  0xf5   : >> { %2192 = vmatmul.mubr.f32.gmra.mxu1 %v3227_v15 }
  0xf6   : >> { %2197 = vmatprep.mubr.f32.mxu1 %v4436_v11 }
  0xf7   : >> { %2069 = vmatmul.mubr.f32.gmra.mxu0 %v3245_v0 }
  0xf8   : >> { %2074 = vmatprep.mubr.f32.mxu0 %v4436_v11 }
  0xf9   : >> { %2199 = vmatmul.mubr.f32.gmra.mxu1 %v3235_v63 }
  0xfa   : >> { %2204 = vmatprep.mubr.f32.mxu1 %v4436_v11 }
  0xfb   : >> { %2076 = vmatmul.mubr.f32.gmra.mxu0 %v3262_v18 }
  0xfc   : >> { %2081 = vmatprep.mubr.f32.mxu0 %v4436_v11 }
  0xfd   : >> { %2206 = vmatmul.mubr.f32.gmra.mxu1 %v3245_v0 }
  0xfe   : >> { %2211 = vmatprep.mubr.f32.mxu1 %v4436_v11 }
  0xff   : >> { %2083 = vmatmul.mubr.f32.gmra.mxu0 %v3276_v62 }
 0x101   : >> { %2213 = vmatmul.mubr.f32.gmra.mxu1 %v3262_v18  ;;  %v3839_v15 = vpop.f32.mrf.mxu0 }
 0x102   : >> { %2218 = vmatprep.mubr.f32.mxu1 %v4436_v11 }
 0x103   : >> { %v3842_v16 = vpop.f32.mrf.mxu0 }
 0x105   : >> { %2220 = vmatmul.mubr.f32.gmra.mxu1 %v3276_v62  ;;  %v3845_v28 = vpop.f32.mrf.mxu0 }
 0x107   : >> { %v3847_v63 = vpop.f32.mrf.mxu0 }
 0x109   : >> { %v562_v57 = vpop.f32.mrf.mxu1 }
 0x10b   : >> { %v3849_v0 = vpop.f32.mrf.mxu0  ;;  %v564_v39 = vpop.f32.mrf.mxu1 }
 0x10c   : >> { %v565_v24 = vadd.f32 %v564_v39, %v3842_v16 }
 0x10d   : >> { %v3851_v44 = vpop.f32.mrf.mxu0  ;;  %v569_v40 = vpop.f32.mrf.mxu1 }
 0x10f   : >> { %v3853_v18 = vpop.f32.mrf.mxu0  ;;  %v571_v50 = vpop.f32.mrf.mxu1 }
 0x111   : >> { %v3855_v41 = vpop.f32.mrf.mxu0  ;;  %v3857_v11 = vpop.f32.mrf.mxu1 }
 0x113   : >> { %v3859_v52 = vpop.f32.mrf.mxu0  ;;  %v3861_v62 = vpop.f32.mrf.mxu1 }
 0x114   : >> { %v579_v16 = vadd.f32 %v3861_v62, %v3851_v44 }
 0x115   : >> { %v3863_v56 = vpop.f32.mrf.mxu0  ;;  %v3865_v49 = vpop.f32.mrf.mxu1 }
 0x117   : >> { %v3867_v25 = vpop.f32.mrf.mxu0  ;;  %v3869_v59 = vpop.f32.mrf.mxu1 }
 0x119   : >> { %v3871_v47 = vpop.f32.mrf.mxu0  ;;  %v590_v2 = vpop.f32.mrf.mxu1 }
 0x11b   : >> { %v3873_v33 = vpop.f32.mrf.mxu0  ;;  %v592_v35 = vpop.f32.mrf.mxu1 }
 0x11d   : >> { %v3875_v55 = vpop.f32.mrf.mxu0  ;;  %v597_v46 = vpop.f32.mrf.mxu1 }
 0x11f   : >> { %v3877_v43 = vpop.f32.mrf.mxu0  ;;  %v3879_v54 = vpop.f32.mrf.mxu1 }
 0x120   : >> { %v600_v62 = vadd.f32 %v3879_v54, %v3871_v47 }
 0x121   : >> { %v3881_v60 = vpop.f32.mrf.mxu0  ;;  %v3883_v3 = vpop.f32.mrf.mxu1 }
 0x123   : >> { %v716_v53 = vpop.f32.mrf.mxu0  ;;  %v606_v51 = vpop.f32.mrf.mxu1 }
 0x125   : >> { %v718_v58 = vpop.f32.mrf.mxu0  ;;  %v611_v37 = vpop.f32.mrf.mxu1 }
 0x127   : >> { %v724_v45 = vpop.f32.mrf.mxu0  ;;  %v3885_v38 = vpop.f32.mrf.mxu1 }
 0x129   : >> { %v726_v13 = vpop.f32.mrf.mxu0  ;;  %v862_v9 = vpop.f32.mrf.mxu1 }
 0x12b   : >> { %v3887_v12 = vpop.f32.mrf.mxu0  ;;  %v864_v30 = vpop.f32.mrf.mxu1 }
 0x12d   : >> { %v3889_v31 = vpop.f32.mrf.mxu0  ;;  %v871_v34 = vpop.f32.mrf.mxu1 }
 0x12e   : >> { %v735_v54 = vadd.f32 %v3889_v31, %v579_v16 }
 0x12f   : >> { %v740_v7 = vpop.f32.mrf.mxu0  ;;  %v3891_v19 = vpop.f32.mrf.mxu1 }
 0x131   : >> { %v3893_v27 = vpop.f32.mrf.mxu0  ;;  %v3895_v1 = vpop.f32.mrf.mxu1 }
 0x133   : >> { %v3897_v48 = vpop.f32.mrf.mxu0  ;;  %v3899_v61 = vpop.f32.mrf.mxu1 }
 0x135   : >> { %v3901_v8 = vpop.f32.mrf.mxu0  ;;  %v3903_v20 = vpop.f32.mrf.mxu1 }
 0x137   : >> { %v3905_v4 = vpop.f32.mrf.mxu0  ;;  %v3907_v32 = vpop.f32.mrf.mxu1 }
 0x138   : >> { %4510 = vst [vmem:[#allocation39_spill] sm:$0xff] %v3907_v32 }
 0x139   : >> { %v3909_v17 = vpop.f32.mrf.mxu0  ;;  %v3911_v21 = vpop.f32.mrf.mxu1 }
 0x13a   : >> { %4511 = vst [vmem:[#allocation40_spill] sm:$0xff] %v3909_v17  ;;  %4512 = vst [vmem:[#allocation41_spill] sm:$0xff] %v3911_v21  ;;  %v2233_v21 = vsub.s32 1, %v3921_v29 }
 0x13b   : >> { %v3913_v14 = vpop.f32.mrf.mxu0  ;;  %v3915_v10 = vpop.f32.mrf.mxu1 }
 0x13c   : >> { %4513 = vst [vmem:[#allocation42_spill] sm:$0xff] %v3913_v14  ;;  %4514 = vst [vmem:[#allocation43_spill] sm:$0xff] %v3915_v10  ;;  %v563_v10 = vadd.f32 %v562_v57, %v3839_v15  ;;  %v577_v15 = vadd.f32 %v3857_v11, %v3849_v0  ;;  %v719_v57 = vadd.f32 %v718_v58, %v565_v24 }
 0x13d   : >> { %v3917_v22 = vpop.f32.mrf.mxu0  ;;  %v3919_v23 = vpop.f32.mrf.mxu1  ;;  %v598_v0 = vadd.f32 %v597_v46, %v3867_v25  ;;  %v3970_v46 = vadd.f32 %v3885_v38, %v3881_v60  ;;  %v883_v38 = vadd.f32 %v3899_v61, %v735_v54 }
 0x13e   : >> { %4515 = vst [vmem:[#allocation44_spill] sm:$0xff] %v3917_v22  ;;  %4516 = vst [vmem:[#allocation48_spill] sm:$0xff] %v3919_v23  ;;  %v717_v23 = vadd.f32 %v716_v53, %v563_v10  ;;  %v865_v10 = vadd.f32 %v864_v30, %v719_v57  ;;  %v733_v47 = vadd.f32 %v3887_v12, %v577_v15 }
 0x13f   : >> { %v3923_v5 = vpop.f32.mrf.mxu0  ;;  %v3925_v36 = vpop.f32.mrf.mxu1 }
 0x140   : >> { %4518 = vst [vmem:[#allocation38_spill] sm:$0xff] %v3923_v5  ;;  %4519 = vst [vmem:[#allocation46_spill] sm:$0xff] %v3925_v36  ;;  %v570_v5 = vadd.f32 %v569_v40, %v3845_v28  ;;  %v572_v36 = vadd.f32 %v571_v50, %v3847_v63  ;;  %v863_v39 = vadd.f32 %v862_v9, %v717_v23 }
 0x141   : >> { %v3927_v42 = vpop.f32.mrf.mxu0  ;;  %v3929_v6 = vpop.f32.mrf.mxu1  ;;  %v584_v28 = vadd.f32 %v3865_v49, %v3853_v18  ;;  %v586_v63 = vadd.f32 %v3869_v59, %v3855_v41  ;;  %v591_v40 = vadd.f32 %v590_v2, %v3859_v52  ;;  %v593_v50 = vadd.f32 %v592_v35, %v3863_v56  ;;  %v4526_v16 = vld [vmem:[#allocation41_spill] sm:$0xff] }
 0x142   : >> { %4520 = vst [vmem:[#allocation45_spill] sm:$0xff] %v3927_v42  ;;  %4521 = vst [vmem:[#allocation47_spill] sm:$0xff] %v3929_v6  ;;  %v4522_v6 = vld [vmem:[#allocation37_spill] sm:$0xff]  ;;  %v725_v11 = vadd.f32 %v724_v45, %v570_v5  ;;  %v605_v18 = vadd.f32 %v3883_v3, %v3873_v33  ;;  %v607_v41 = vadd.f32 %v606_v51, %v3875_v55 }
 0x143   : >> { %v1045_v14 = vpop.f32.mrf.mxu0  ;;  %v3934_v22 = vpop.f32.mrf.mxu1  ;;  %v3942_v32 = vrot.slane %v4522_v6, %v2229_v26  ;;  %v3945_v29 = vrot.slane %v4522_v6, %v2233_v21  ;;  %v3966_v52 = vadd.f32 %v611_v37, %v3877_v43  ;;  %v727_v59 = vadd.f32 %v726_v13, %v572_v36 }
 0x144   : >> { %v1046_v44 = vadd.f32 %v1045_v14, %v863_v39  ;;  %v872_v2 = vadd.f32 %v871_v34, %v725_v11  ;;  %v741_v33 = vadd.f32 %v740_v7, %v584_v28  ;;  %v743_v45 = vadd.f32 %v3893_v27, %v586_v63  ;;  %v4523_v14 = vld [vmem:[#allocation39_spill] sm:$0xff] }
 0x145   : >> { %v1047_v17 = vpop.f32.mrf.mxu0  ;;  %v3939_v42 = vpop.f32.mrf.mxu1  ;;  %v874_v43 = vadd.f32 %v3891_v19, %v727_v59  ;;  %v749_v13 = vadd.f32 %v3897_v48, %v591_v40  ;;  %v881_v60 = vadd.f32 %v3895_v1, %v733_v47  ;;  %v751_v30 = vadd.f32 %v3901_v8, %v593_v50  ;;  %v4524_v1 = vld [vmem:[#allocation40_spill] sm:$0xff]  ;;  %v4525_v8 = vld [vmem:[#allocation42_spill] sm:$0xff] }
 0x146   : >> { %v1048_v35 = vadd.f32 %v1047_v17, %v865_v10  ;;  %v757_v19 = vadd.f32 %v3905_v4, %v598_v0  ;;  %v890_v17 = vadd.f32 %v3903_v20, %v741_v33  ;;  %v892_v27 = vadd.f32 %v4523_v14, %v743_v45  ;;  %v4527_v20 = vld [vmem:[#allocation43_spill] sm:$0xff]  ;;  %v4528_v11 = vld [vmem:[#allocation44_spill] sm:$0xff] }
 0x147   : >> { %v1052_v53 = vpop.f32.mrf.mxu0  ;;  %v3957_v21 = vpop.f32.mrf.mxu1  ;;  %v759_v36 = vadd.f32 %v4524_v1, %v600_v62  ;;  %v765_v15 = vadd.f32 %v4525_v8, %v605_v18  ;;  %v899_v57 = vadd.f32 %v4526_v16, %v749_v13  ;;  %v901_v40 = vadd.f32 %v4527_v20, %v751_v30 }
 0x148   : >> { %v1053_v51 = vadd.f32 %v1052_v53, %v872_v2  ;;  %v767_v10 = vadd.f32 %v4528_v11, %v607_v41 }
 0x149   : >> { %v1054_v56 = vpop.f32.mrf.mxu0  ;;  %v1182_v49 = vpop.f32.mrf.mxu1 }
 0x14a   : >> { %v1183_v25 = vadd.f32 %v1182_v49, %v1046_v44  ;;  %v1055_v23 = vadd.f32 %v1054_v56, %v874_v43 }
 0x14b   : >> { %v1059_v3 = vpop.f32.mrf.mxu0  ;;  %v1184_v55 = vpop.f32.mrf.mxu1 }
 0x14c   : >> { %v2247_v58 = vsub.f32 %v1183_v25, %v3942_v32  ;;  %v1185_v37 = vadd.f32 %v1184_v55, %v1048_v35  ;;  %v1060_v39 = vadd.f32 %v1059_v3, %v881_v60  ;;  %v4529_v25 = vld [vmem:[#allocation48_spill] sm:$0xff] }
 0x14d   : >> { %v1061_v9 = vpop.f32.mrf.mxu0  ;;  %v1189_v12 = vpop.f32.mrf.mxu1  ;;  %v908_v47 = vadd.f32 %v4529_v25, %v757_v19 }
 0x14e   : >> { %v2279_v31 = vmul.f32 %v2247_v58, %v2247_v58  ;;  %v2248_v34 = vsub.f32 %v1185_v37, %v3945_v29  ;;  %v1190_v7 = vadd.f32 %v1189_v12, %v1053_v51  ;;  %v1062_v44 = vadd.f32 %v1061_v9, %v883_v38  ;;  %v4530_v37 = vld [vmem:[#allocation38_spill] sm:$0xff] }
 0x14f   : >> { %v1066_v48 = vpop.f32.mrf.mxu0  ;;  %v1191_v5 = vpop.f32.mrf.mxu1  ;;  %v773_v45 = vadd.f32 %v4530_v37, %v3966_v52 }
 0x150   : >> { %v2311_v61 = vsub.f32 0.0, %v2279_v31  ;;  %v2280_v26 = vmul.f32 %v2248_v34, %v2248_v34  ;;  %v2251_v24 = vsub.f32 %v1190_v7, %v3942_v32  ;;  %v1192_v4 = vadd.f32 %v1191_v5, %v1055_v23  ;;  %v4531_v7 = vld [vmem:[#allocation46_spill] sm:$0xff] }
 0x151   : >> { %v1068_v28 = vpop.f32.mrf.mxu0  ;;  %v1196_v63 = vpop.f32.mrf.mxu1  ;;  %v1067_v2 = vadd.f32 %v1066_v48, %v890_v17  ;;  %v910_v19 = vadd.f32 %v4531_v7, %v759_v36  ;;  %v4532_v48 = vld [vmem:[#allocation45_spill] sm:$0xff]  ;;  %v4533_v36 = vld [vmem:[#allocation47_spill] sm:$0xff] }
 0x152   : >> { %v2343_v50 = vmul.f32 1.442695, %v2311_v61  ;;  %v2312_v53 = vsub.f32 0.0, %v2280_v26  ;;  %v2283_v0 = vmul.f32 %v2251_v24, %v2251_v24  ;;  %v2252_v62 = vsub.f32 %v1192_v4, %v3945_v29 }
 0x153   : >> { %v1073_v56 = vpop.f32.mrf.mxu0  ;;  %v1197_v49 = vadd.f32 %v1196_v63, %v1060_v39  ;;  %v1198_v59 = vpop.f32.mrf.mxu1  ;;  %v1069_v51 = vadd.f32 %v1068_v28, %v892_v27  ;;  %v775_v5 = vadd.f32 %v4532_v48, %v3970_v46  ;;  %v917_v28 = vadd.f32 %v4533_v36, %v765_v15 }
 0x154   : >> { %2599 = vpow2.f32 %v2343_v50  ;;  %v2345_v18 = vmul.f32 1.442695, %v2312_v53  ;;  %v2315_v35 = vsub.f32 0.0, %v2283_v0  ;;  %v2284_v54 = vmul.f32 %v2252_v62, %v2252_v62 }
 0x155   : >> { %v2255_v33 = vsub.f32 %v1197_v49, %v3942_v32  ;;  %v1075_v3 = vpop.f32.mrf.mxu0  ;;  %v1199_v55 = vadd.f32 %v1198_v59, %v1062_v44  ;;  %v1203_v43 = vpop.f32.mrf.mxu1  ;;  %v1074_v30 = vadd.f32 %v1073_v56, %v899_v57  ;;  %v919_v44 = vadd.f32 %v3934_v22, %v767_v10 }
 0x156   : >> { %2601 = vpow2.f32 %v2345_v18  ;;  %v2351_v41 = vmul.f32 1.442695, %v2315_v35  ;;  %v1204_v58 = vadd.f32 %v1203_v43, %v1067_v2  ;;  %v2316_v13 = vsub.f32 0.0, %v2284_v54 }
 0x157   : >> { %v2287_v60 = vmul.f32 %v2255_v33, %v2255_v33  ;;  %v2256_v38 = vsub.f32 %v1199_v55, %v3945_v29  ;;  %v1080_v9 = vpop.f32.mrf.mxu0  ;;  %v1205_v12 = vpop.f32.mrf.mxu1  ;;  %v1076_v8 = vadd.f32 %v1075_v3, %v901_v40  ;;  %v926_v22 = vadd.f32 %v3939_v42, %v773_v45 }
 0x158   : >> { %2603 = vpow2.f32 %v2351_v41  ;;  %v2259_v31 = vsub.f32 %v1204_v58, %v3942_v32  ;;  %v1206_v34 = vadd.f32 %v1205_v12, %v1069_v51  ;;  %v2353_v17 = vmul.f32 1.442695, %v2316_v13 }
 0x159   : >> { %v2319_v14 = vsub.f32 0.0, %v2287_v60  ;;  %v2288_v52 = vmul.f32 %v2256_v38, %v2256_v38  ;;  %v1082_v27 = vpop.f32.mrf.mxu0  ;;  %v1210_v23 = vpop.f32.mrf.mxu1  ;;  %v1081_v50 = vadd.f32 %v1080_v9, %v908_v47  ;;  %v928_v13 = vadd.f32 %v3957_v21, %v775_v5 }
 0x15a   : >> { %v2291_v1 = vmul.f32 %v2259_v31, %v2259_v31  ;;  %v2260_v61 = vsub.f32 %v1206_v34, %v3945_v29  ;;  %v1211_v26 = vadd.f32 %v1210_v23, %v1074_v30  ;;  %2605 = vpow2.f32 %v2353_v17 }
 0x15b   : >> { %v2359_v24 = vmul.f32 1.442695, %v2319_v14  ;;  %v2320_v16 = vsub.f32 0.0, %v2288_v52  ;;  %v1087_v57 = vpop.f32.mrf.mxu0  ;;  %v1212_v39 = vpop.f32.mrf.mxu1  ;;  %v1083_v15 = vadd.f32 %v1082_v27, %v910_v19 }
 0x15c   : >> { %v2323_v4 = vsub.f32 0.0, %v2291_v1  ;;  %v2292_v63 = vmul.f32 %v2260_v61, %v2260_v61  ;;  %v2263_v20 = vsub.f32 %v1211_v26, %v3942_v32  ;;  %v1213_v0 = vadd.f32 %v1212_v39, %v1076_v8 }
 0x15d   : >> { %2607 = vpow2.f32 %v2359_v24  ;;  %v2361_v46 = vmul.f32 1.442695, %v2320_v16  ;;  %v1089_v53 = vpop.f32.mrf.mxu0  ;;  %v1217_v11 = vpop.f32.mrf.mxu1  ;;  %v1088_v25 = vadd.f32 %v1087_v57, %v917_v28 }
 0x15e   : >> { %v2367_v40 = vmul.f32 1.442695, %v2323_v4  ;;  %v2324_v62 = vsub.f32 0.0, %v2292_v63  ;;  %v2295_v56 = vmul.f32 %v2263_v20, %v2263_v20  ;;  %v2264_v49 = vsub.f32 %v1213_v0, %v3945_v29 }
 0x15f   : >> { %2609 = vpow2.f32 %v2361_v46  ;;  %v1094_v59 = vpop.f32.mrf.mxu0  ;;  %v1218_v18 = vadd.f32 %v1217_v11, %v1081_v50  ;;  %v1219_v2 = vpop.f32.mrf.mxu1  ;;  %v1090_v51 = vadd.f32 %v1089_v53, %v919_v44 }
 0x160   : >> { %2611 = vpow2.f32 %v2367_v40  ;;  %v2369_v35 = vmul.f32 1.442695, %v2324_v62  ;;  %v2327_v47 = vsub.f32 0.0, %v2295_v56  ;;  %v2296_v10 = vmul.f32 %v2264_v49, %v2264_v49 }
 0x161   : >> { %v2600_v54 = vpop.eup %2599  ;;  %v2267_v33 = vsub.f32 %v1218_v18, %v3942_v32  ;;  %v1096_v3 = vpop.f32.mrf.mxu0  ;;  %v1220_v55 = vadd.f32 %v1219_v2, %v1083_v15  ;;  %v1095_v12 = vadd.f32 %v1094_v59, %v926_v22 }
 0x162   : >> { %v1224_v43 = vpop.f32.mrf.mxu1  ;;  %2412 = vst [vmem:[%s4012_s27] sm:$0xff] %v2600_v54  ;;  %2613 = vpow2.f32 %v2369_v35  ;;  %v2375_v41 = vmul.f32 1.442695, %v2327_v47  ;;  %v2328_v60 = vsub.f32 0.0, %v2296_v10  ;;  %v1097_v52 = vadd.f32 %v1096_v3, %v928_v13 }
 0x163   : >> { %v1225_v58 = vadd.f32 %v1224_v43, %v1088_v25  ;;  %v2602_v37 = vpop.eup %2601  ;;  %v2299_v38 = vmul.f32 %v2267_v33, %v2267_v33  ;;  %v2268_v42 = vsub.f32 %v1220_v55, %v3945_v29  ;;  %v4020_v45 = vpop.f32.mrf.mxu0 }
 0x164   : >> { %v1226_v9 = vpop.f32.mrf.mxu1  ;;  %2413 = vst [vmem:[%s4012_s27 + $0x8] sm:$0xff] %v2602_v37  ;;  %2615 = vpow2.f32 %v2375_v41  ;;  %v2377_v7 = vmul.f32 1.442695, %v2328_v60 }
 0x165   : >> { %v2271_v30 = vsub.f32 %v1225_v58, %v3942_v32  ;;  %v1227_v31 = vadd.f32 %v1226_v9, %v1090_v51  ;;  %v2604_v34 = vpop.eup %2603  ;;  %v2331_v19 = vsub.f32 0.0, %v2299_v38  ;;  %v2300_v17 = vmul.f32 %v2268_v42, %v2268_v42  ;;  %v4024_v14 = vpop.f32.mrf.mxu0 }
 0x166   : >> { %v1231_v21 = vpop.f32.mrf.mxu1  ;;  %2416 = vst [vmem:[%s4012_s27 + $0x20] sm:$0xff] %v2604_v34  ;;  %2617 = vpow2.f32 %v2377_v7 }
 0x167   : >> { %v2303_v27 = vmul.f32 %v2271_v30, %v2271_v30  ;;  %v2272_v23 = vsub.f32 %v1227_v31, %v3945_v29  ;;  %v1232_v48 = vadd.f32 %v1231_v21, %v1095_v12  ;;  %v2383_v5 = vmul.f32 1.442695, %v2331_v19  ;;  %v4028_v61 = vpop.f32.mrf.mxu0  ;;  %v2606_v24 = vpop.eup %2605 }
 0x168   : >> { %v2332_v1 = vsub.f32 0.0, %v2300_v17  ;;  %v1233_v26 = vpop.f32.mrf.mxu1  ;;  %2417 = vst [vmem:[%s4012_s27 + $0x28] sm:$0xff] %v2606_v24 }
 0x169   : >> { %v2335_v8 = vsub.f32 0.0, %v2303_v27  ;;  %v2304_v16 = vmul.f32 %v2272_v23, %v2272_v23  ;;  %v2275_v57 = vsub.f32 %v1232_v48, %v3942_v32  ;;  %v1234_v39 = vadd.f32 %v1233_v26, %v1097_v52  ;;  %v4032_v28 = vpop.f32.mrf.mxu0 }
 0x16a   : >> { %2619 = vpow2.f32 %v2383_v5  ;;  %v2385_v36 = vmul.f32 1.442695, %v2332_v1  ;;  %v4034_v4 = vpop.f32.mrf.mxu1  ;;  %v2608_v63 = vpop.eup %2607 }
 0x16b   : >> { %v2391_v20 = vmul.f32 1.442695, %v2335_v8  ;;  %v2336_v46 = vsub.f32 0.0, %v2304_v16  ;;  %v2307_v50 = vmul.f32 %v2275_v57, %v2275_v57  ;;  %v2276_v53 = vsub.f32 %v1234_v39, %v3945_v29  ;;  %2420 = vst [vmem:[%s4012_s27 + $0x40] sm:$0xff] %v2608_v63  ;;  %v4038_v0 = vpop.f32.mrf.mxu0 }
 0x16c   : >> { %2621 = vpow2.f32 %v2385_v36  ;;  %v4040_v32 = vpop.f32.mrf.mxu1  ;;  %v2610_v11 = vpop.eup %2609 }
 0x16d   : >> { %2623 = vpow2.f32 %v2391_v20  ;;  %v2393_v44 = vmul.f32 1.442695, %v2336_v46  ;;  %v2339_v40 = vsub.f32 0.0, %v2307_v50  ;;  %v2308_v62 = vmul.f32 %v2276_v53, %v2276_v53  ;;  %v2612_v56 = vpop.eup %2611  ;;  %2421 = vst [vmem:[%s4012_s27 + $0x48] sm:$0xff] %v2610_v11  ;;  %v4043_v15 = vpop.f32.mrf.mxu0 }
 0x16e   : >> { %v4045_v49 = vpop.f32.mrf.mxu1  ;;  %2424 = vst [vmem:[%s4012_s27 + $0x60] sm:$0xff] %v2612_v56 }
 0x16f   : >> { %2625 = vpow2.f32 %v2393_v44  ;;  %v2399_v29 = vmul.f32 1.442695, %v2339_v40  ;;  %v2340_v59 = vsub.f32 0.0, %v2308_v62  ;;  %v2614_v18 = vpop.eup %2613  ;;  %v4048_v2 = vpop.f32.mrf.mxu0 }
 0x170   : >> { %v4050_v35 = vpop.f32.mrf.mxu1  ;;  %2425 = vst [vmem:[%s4012_s27 + $0x68] sm:$0xff] %v2614_v18 }
 0x171   : >> { %2627 = vpow2.f32 %v2399_v29  ;;  %v2401_v25 = vmul.f32 1.442695, %v2340_v59  ;;  %v2616_v47 = vpop.eup %2615  ;;  %v4053_v54 = vpop.f32.mrf.mxu0 }
 0x172   : >> { %v4055_v22 = vpop.f32.mrf.mxu1  ;;  %2428 = vst [vmem:[%s4012_s27 + $0x80] sm:$0xff] %v2616_v47 }
 0x173   : >> { %2629 = vpow2.f32 %v2401_v25  ;;  %v4058_v10 = vpop.f32.mrf.mxu0  ;;  %v2618_v3 = vpop.eup %2617 }
 0x174   : >> { %v4060_v33 = vpop.f32.mrf.mxu1  ;;  %2429 = vst [vmem:[%s4012_s27 + $0x88] sm:$0xff] %v2618_v3 }
 0x175   : >> { %v4063_v55 = vpop.f32.mrf.mxu0 }
 0x176   : >> { %v4065_v43 = vpop.f32.mrf.mxu1 }
 0x177   : >> { %v2620_v41 = vpop.eup %2619  ;;  %v4068_v51 = vpop.f32.mrf.mxu0 }
 0x178   : >> { %2432 = vst [vmem:[%s4012_s27 + $0xa0] sm:$0xff] %v2620_v41  ;;  %v4070_v58 = vpop.f32.mrf.mxu1 }
 0x179   : >> { %v2622_v37 = vpop.eup %2621  ;;  %v4073_v60 = vpop.f32.mrf.mxu0 }
 0x17a   : >> { %v2624_v13 = vpop.eup %2623  ;;  %2433 = vst [vmem:[%s4012_s27 + $0xa8] sm:$0xff] %v2622_v37  ;;  %v4075_v38 = vpop.f32.mrf.mxu1 }
 0x17b   : >> { %2436 = vst [vmem:[%s4012_s27 + $0xc0] sm:$0xff] %v2624_v13  ;;  %v4078_v9 = vpop.f32.mrf.mxu0 }
 0x17c   : >> { %v2626_v42 = vpop.eup %2625  ;;  %v4080_v12 = vpop.f32.mrf.mxu1 }
 0x17d   : >> { %2437 = vst [vmem:[%s4012_s27 + $0xc8] sm:$0xff] %v2626_v42  ;;  %v4083_v31 = vpop.f32.mrf.mxu0 }
 0x17e   : >> { %v2628_v30 = vpop.eup %2627  ;;  %v4085_v34 = vpop.f32.mrf.mxu1 }
 0x17f   : >> { %2440 = vst [vmem:[%s4012_s27 + $0xe0] sm:$0xff] %v2628_v30  ;;  %v4088_v19 = vpop.f32.mrf.mxu0  ;;  %v4544_v30 = vld [vmem:[#allocation49_spill] sm:$0xff] }
 0x180   : >> { %v2630_v7 = vpop.eup %2629  ;;  %v4090_v17 = vpop.f32.mrf.mxu1 }
 0x181   : >> { %2441 = vst [vmem:[%s4012_s27 + $0xe8] sm:$0xff] %v2630_v7  ;;  %v4093_v21 = vpop.f32.mrf.mxu0  ;;  %v2237_v7 = vsub.s32 2, %v4544_v30 }
 0x182   : >> { %v1594_v52 = vpop.f32.mrf.mxu1 }
 0x183   : >> { %v1706_v27 = vpop.f32.mrf.mxu0 }
 0x184   : >> { %v1596_v23 = vpop.f32.mrf.mxu1 }
 0x185   : >> { %v1708_v48 = vpop.f32.mrf.mxu0 }
 0x186   : >> { %v1601_v5 = vpop.f32.mrf.mxu1 }
 0x187   : >> { %v1714_v1 = vpop.f32.mrf.mxu0 }
 0x188   : >> { %v4095_v26 = vpop.f32.mrf.mxu1 }
 0x189   : >> { %v1716_v24 = vpop.f32.mrf.mxu0 }
 0x18a   : >> { %v1852_v8 = vpop.f32.mrf.mxu1 }
 0x18b   : >> { %v1722_v16 = vpop.f32.mrf.mxu0 }
 0x18c   : >> { %v1854_v57 = vpop.f32.mrf.mxu1 }
 0x18d   : >> { %v1724_v39 = vpop.f32.mrf.mxu0 }
 0x18e   : >> { %v1861_v36 = vpop.f32.mrf.mxu1 }
 0x18f   : >> { %v1730_v63 = vpop.f32.mrf.mxu0 }
 0x190   : >> { %v1863_v20 = vpop.f32.mrf.mxu1 }
 0x191   : >> { %v4097_v46 = vpop.f32.mrf.mxu0 }
 0x192   : >> { %v4099_v50 = vpop.f32.mrf.mxu1 }
 0x193   : >> { %v4101_v53 = vpop.f32.mrf.mxu0 }
 0x194   : >> { %v4103_v11 = vpop.f32.mrf.mxu1 }
 0x195   : >> { %v4105_v44 = vpop.f32.mrf.mxu0 }
 0x196   : >> { %v4107_v40 = vpop.f32.mrf.mxu1 }
 0x197   : >> { %v4109_v62 = vpop.f32.mrf.mxu0 }
 0x198   : >> { %v4111_v56 = vpop.f32.mrf.mxu1 }
 0x199   : >> { %v4113_v29 = vpop.f32.mrf.mxu0 }
 0x19a   : >> { %4534 = vst [vmem:[#allocation39_spill] sm:$0xff] %v4113_v29  ;;  %v4115_v59 = vpop.f32.mrf.mxu1 }
 0x19b   : >> { %4535 = vst [vmem:[#allocation40_spill] sm:$0xff] %v4115_v59  ;;  %v4117_v18 = vpop.f32.mrf.mxu0  ;;  %v2241_v59 = vsub.s32 3, %v4544_v30  ;;  %v4148_v30 = vrot.slane %v4522_v6, %v2237_v7 }
 0x19c   : >> { %4536 = vst [vmem:[#allocation42_spill] sm:$0xff] %v4117_v18  ;;  %v4119_v25 = vpop.f32.mrf.mxu1  ;;  %v1553_v18 = vadd.f32 %v4034_v4, %v4020_v45  ;;  %v1567_v4 = vadd.f32 %v4055_v22, %v4038_v0  ;;  %v1588_v0 = vadd.f32 %v4085_v34, %v4068_v51  ;;  %v4178_v51 = vadd.f32 %v4095_v26, %v4093_v21 }
 0x19d   : >> { %4537 = vst [vmem:[#allocation41_spill] sm:$0xff] %v4119_v25  ;;  %v4121_v47 = vpop.f32.mrf.mxu0  ;;  %v4151_v45 = vrot.slane %v4522_v6, %v2241_v59 }
 0x19e   : >> { %4538 = vst [vmem:[#allocation43_spill] sm:$0xff] %v4121_v47  ;;  %v4123_v3 = vpop.f32.mrf.mxu1  ;;  %v1723_v34 = vadd.f32 %v1722_v16, %v1567_v4 }
 0x19f   : >> { %4539 = vst [vmem:[#allocation44_spill] sm:$0xff] %v4123_v3  ;;  %v4125_v41 = vpop.f32.mrf.mxu0  ;;  %v1555_v3 = vadd.f32 %v4040_v32, %v4024_v14  ;;  %v1569_v14 = vadd.f32 %v4060_v33, %v4043_v15 }
 0x1a0   : >> { %4540 = vst [vmem:[#allocation48_spill] sm:$0xff] %v4125_v41  ;;  %v4127_v37 = vpop.f32.mrf.mxu1  ;;  %v1707_v41 = vadd.f32 %v1706_v27, %v1553_v18  ;;  %v1583_v27 = vadd.f32 %v4080_v12, %v4063_v55 }
 0x1a1   : >> { %4541 = vst [vmem:[#allocation38_spill] sm:$0xff] %v4127_v37  ;;  %v4129_v13 = vpop.f32.mrf.mxu0  ;;  %v1560_v37 = vadd.f32 %v4045_v49, %v4028_v61  ;;  %v1709_v32 = vadd.f32 %v1708_v48, %v1555_v3  ;;  %v1576_v49 = vadd.f32 %v4070_v58, %v4053_v54  ;;  %v1595_v54 = vadd.f32 %v1594_v52, %v4078_v9 }
 0x1a2   : >> { %4542 = vst [vmem:[#allocation46_spill] sm:$0xff] %v4129_v13  ;;  %v4131_v42 = vpop.f32.mrf.mxu1  ;;  %v1853_v61 = vadd.f32 %v1852_v8, %v1707_v41  ;;  %v1741_v16 = vadd.f32 %v4105_v44, %v1583_v27 }
 0x1a3   : >> { %4543 = vst [vmem:[#allocation45_spill] sm:$0xff] %v4131_v42  ;;  %v2035_v25 = vpop.f32.mrf.mxu0  ;;  %v1562_v42 = vadd.f32 %v4050_v35, %v4032_v28  ;;  %v1574_v28 = vadd.f32 %v4065_v43, %v4048_v2  ;;  %v1581_v35 = vadd.f32 %v4075_v38, %v4058_v10  ;;  %v1715_v15 = vadd.f32 %v1714_v1, %v1560_v37  ;;  %v4546_v44 = vld [vmem:[#allocation42_spill] sm:$0xff] }
 0x1a4   : >> { %v4137_v29 = vpop.f32.mrf.mxu1  ;;  %v1855_v22 = vadd.f32 %v1854_v57, %v1709_v32  ;;  %v2036_v33 = vadd.f32 %v2035_v25, %v1853_v61  ;;  %v1590_v2 = vadd.f32 %v4090_v17, %v4073_v60  ;;  %v1597_v43 = vadd.f32 %v1596_v23, %v4083_v31 }
 0x1a5   : >> { %v2037_v13 = vpop.f32.mrf.mxu0  ;;  %v4174_v10 = vadd.f32 %v1601_v5, %v4088_v19  ;;  %v1717_v38 = vadd.f32 %v1716_v24, %v1562_v42  ;;  %v1862_v12 = vadd.f32 %v1861_v36, %v1715_v15  ;;  %v1725_v1 = vadd.f32 %v1724_v39, %v1569_v14  ;;  %v4547_v14 = vld [vmem:[#allocation40_spill] sm:$0xff] }
 0x1a6   : >> { %v4145_v47 = vpop.f32.mrf.mxu1  ;;  %v2038_v48 = vadd.f32 %v2037_v13, %v1855_v22  ;;  %v1731_v60 = vadd.f32 %v1730_v63, %v1574_v28  ;;  %v1733_v5 = vadd.f32 %v4097_v46, %v1576_v49  ;;  %v1739_v24 = vadd.f32 %v4101_v53, %v1581_v35 }
 0x1a7   : >> { %v2042_v59 = vpop.f32.mrf.mxu0  ;;  %v1864_v52 = vadd.f32 %v1863_v20, %v1717_v38  ;;  %v1871_v57 = vadd.f32 %v4099_v50, %v1723_v34  ;;  %v1873_v36 = vadd.f32 %v4103_v11, %v1725_v1  ;;  %v1747_v25 = vadd.f32 %v4109_v62, %v1588_v0  ;;  %v4545_v50 = vld [vmem:[#allocation39_spill] sm:$0xff] }
 0x1a8   : >> { %v4165_v18 = vpop.f32.mrf.mxu1  ;;  %v2043_v31 = vadd.f32 %v2042_v59, %v1862_v12  ;;  %v1880_v3 = vadd.f32 %v4107_v40, %v1731_v60  ;;  %v1882_v46 = vadd.f32 %v4111_v56, %v1733_v5  ;;  %v1749_v13 = vadd.f32 %v4545_v50, %v1590_v2  ;;  %v4548_v40 = vld [vmem:[#allocation41_spill] sm:$0xff]  ;;  %v4549_v0 = vld [vmem:[#allocation43_spill] sm:$0xff] }
 0x1a9   : >> { %v2044_v55 = vpop.f32.mrf.mxu0  ;;  %v1755_v4 = vadd.f32 %v4546_v44, %v1595_v54  ;;  %v1889_v32 = vadd.f32 %v4547_v14, %v1739_v24  ;;  %v1891_v35 = vadd.f32 %v4548_v40, %v1741_v16  ;;  %v1757_v15 = vadd.f32 %v4549_v0, %v1597_v43 }
 0x1aa   : >> { %v2172_v58 = vpop.f32.mrf.mxu1  ;;  %v2045_v41 = vadd.f32 %v2044_v55, %v1864_v52 }
 0x1ab   : >> { %v2173_v8 = vadd.f32 %v2172_v58, %v2036_v33  ;;  %v2049_v17 = vpop.f32.mrf.mxu0 }
 0x1ac   : >> { %v2174_v9 = vpop.f32.mrf.mxu1  ;;  %v2050_v61 = vadd.f32 %v2049_v17, %v1871_v57 }
 0x1ad   : >> { %v2249_v19 = vsub.f32 %v2173_v8, %v4148_v30  ;;  %v2175_v23 = vadd.f32 %v2174_v9, %v2038_v48  ;;  %v2051_v21 = vpop.f32.mrf.mxu0  ;;  %v4550_v48 = vld [vmem:[#allocation44_spill] sm:$0xff] }
 0x1ae   : >> { %v2179_v26 = vpop.f32.mrf.mxu1  ;;  %v2052_v22 = vadd.f32 %v2051_v21, %v1873_v36  ;;  %v1898_v8 = vadd.f32 %v4550_v48, %v1747_v25 }
 0x1af   : >> { %v2281_v39 = vmul.f32 %v2249_v19, %v2249_v19  ;;  %v2250_v63 = vsub.f32 %v2175_v23, %v4151_v45  ;;  %v2180_v20 = vadd.f32 %v2179_v26, %v2043_v31  ;;  %v2056_v53 = vpop.f32.mrf.mxu0  ;;  %v4551_v19 = vld [vmem:[#allocation48_spill] sm:$0xff] }
 0x1b0   : >> { %v2181_v37 = vpop.f32.mrf.mxu1  ;;  %v2057_v38 = vadd.f32 %v2056_v53, %v1880_v3  ;;  %v1763_v23 = vadd.f32 %v4551_v19, %v4174_v10  ;;  %v4553_v10 = vld [vmem:[#allocation46_spill] sm:$0xff] }
 0x1b1   : >> { %v2313_v11 = vsub.f32 0.0, %v2281_v39  ;;  %v2282_v42 = vmul.f32 %v2250_v63, %v2250_v63  ;;  %v2253_v7 = vsub.f32 %v2180_v20, %v4148_v30  ;;  %v2058_v28 = vpop.f32.mrf.mxu0  ;;  %v2182_v62 = vadd.f32 %v2181_v37, %v2045_v41  ;;  %v4552_v63 = vld [vmem:[#allocation38_spill] sm:$0xff] }
 0x1b2   : >> { %v2186_v49 = vpop.f32.mrf.mxu1  ;;  %v2059_v52 = vadd.f32 %v2058_v28, %v1882_v46  ;;  %v1900_v20 = vadd.f32 %v4552_v63, %v1749_v13  ;;  %v1765_v37 = vadd.f32 %v4553_v10, %v4178_v51  ;;  %v4554_v28 = vld [vmem:[#allocation45_spill] sm:$0xff] }
 0x1b3   : >> { %v2347_v56 = vmul.f32 1.442695, %v2313_v11  ;;  %v2314_v27 = vsub.f32 0.0, %v2282_v42  ;;  %v2285_v59 = vmul.f32 %v2253_v7, %v2253_v7  ;;  %v2254_v33 = vsub.f32 %v2182_v62, %v4151_v45  ;;  %v2063_v2 = vpop.f32.mrf.mxu0 }
 0x1b4   : >> { %v2187_v55 = vadd.f32 %v2186_v49, %v2050_v61  ;;  %v2188_v58 = vpop.f32.mrf.mxu1  ;;  %v2064_v26 = vadd.f32 %v2063_v2, %v1889_v32  ;;  %v1907_v13 = vadd.f32 %v4554_v28, %v1755_v4  ;;  %v1918_v19 = vadd.f32 %v4165_v18, %v1765_v37 }
 0x1b5   : >> { %2631 = vpow2.f32 %v2347_v56  ;;  %v2349_v54 = vmul.f32 1.442695, %v2314_v27  ;;  %v2317_v12 = vsub.f32 0.0, %v2285_v59  ;;  %v2286_v34 = vmul.f32 %v2254_v33, %v2254_v33  ;;  %v2065_v60 = vpop.f32.mrf.mxu0 }
 0x1b6   : >> { %v2257_v1 = vsub.f32 %v2187_v55, %v4148_v30  ;;  %v2189_v17 = vadd.f32 %v2188_v58, %v2052_v22  ;;  %v2193_v9 = vpop.f32.mrf.mxu1  ;;  %v2066_v44 = vadd.f32 %v2065_v60, %v1891_v35  ;;  %v1909_v22 = vadd.f32 %v4137_v29, %v1757_v15 }
 0x1b7   : >> { %2633 = vpow2.f32 %v2349_v54  ;;  %v2355_v43 = vmul.f32 1.442695, %v2317_v12  ;;  %v2194_v31 = vadd.f32 %v2193_v9, %v2057_v38  ;;  %v2318_v5 = vsub.f32 0.0, %v2286_v34  ;;  %v2070_v36 = vpop.f32.mrf.mxu0 }
 0x1b8   : >> { %v2289_v24 = vmul.f32 %v2257_v1, %v2257_v1  ;;  %v2258_v57 = vsub.f32 %v2189_v17, %v4151_v45  ;;  %v2195_v21 = vpop.f32.mrf.mxu1  ;;  %v2071_v27 = vadd.f32 %v2070_v36, %v1898_v8  ;;  %v1916_v1 = vadd.f32 %v4145_v47, %v1763_v23 }
 0x1b9   : >> { %2635 = vpow2.f32 %v2355_v43  ;;  %v2261_v16 = vsub.f32 %v2194_v31, %v4148_v30  ;;  %v2196_v39 = vadd.f32 %v2195_v21, %v2059_v52  ;;  %v2357_v25 = vmul.f32 1.442695, %v2318_v5  ;;  %v2072_v41 = vpop.f32.mrf.mxu0 }
 0x1ba   : >> { %v2321_v3 = vsub.f32 0.0, %v2289_v24  ;;  %v2290_v46 = vmul.f32 %v2258_v57, %v2258_v57  ;;  %v2200_v53 = vpop.f32.mrf.mxu1  ;;  %v2073_v55 = vadd.f32 %v2072_v41, %v1900_v20 }
 0x1bb   : >> { %v2293_v50 = vmul.f32 %v2261_v16, %v2261_v16  ;;  %v2262_v11 = vsub.f32 %v2196_v39, %v4151_v45  ;;  %v2201_v42 = vadd.f32 %v2200_v53, %v2064_v26  ;;  %2637 = vpow2.f32 %v2357_v25  ;;  %v2077_v32 = vpop.f32.mrf.mxu0 }
 0x1bc   : >> { %v2363_v7 = vmul.f32 1.442695, %v2321_v3  ;;  %v2322_v14 = vsub.f32 0.0, %v2290_v46  ;;  %v2202_v61 = vpop.f32.mrf.mxu1  ;;  %v2078_v48 = vadd.f32 %v2077_v32, %v1907_v13 }
 0x1bd   : >> { %v2325_v62 = vsub.f32 0.0, %v2293_v50  ;;  %v2294_v49 = vmul.f32 %v2262_v11, %v2262_v11  ;;  %v2265_v40 = vsub.f32 %v2201_v42, %v4148_v30  ;;  %v2079_v51 = vpop.f32.mrf.mxu0  ;;  %v2203_v59 = vadd.f32 %v2202_v61, %v2066_v44 }
 0x1be   : >> { %2639 = vpow2.f32 %v2363_v7  ;;  %v2365_v56 = vmul.f32 1.442695, %v2322_v14  ;;  %v2207_v0 = vpop.f32.mrf.mxu1  ;;  %v2080_v43 = vadd.f32 %v2079_v51, %v1909_v22 }
 0x1bf   : >> { %v2371_v33 = vmul.f32 1.442695, %v2325_v62  ;;  %v2326_v2 = vsub.f32 0.0, %v2294_v49  ;;  %v2297_v35 = vmul.f32 %v2265_v40, %v2265_v40  ;;  %v2266_v4 = vsub.f32 %v2203_v59, %v4151_v45  ;;  %v2084_v58 = vpop.f32.mrf.mxu0 }
 0x1c0   : >> { %2641 = vpow2.f32 %v2365_v56  ;;  %v2208_v54 = vadd.f32 %v2207_v0, %v2071_v27  ;;  %v2209_v38 = vpop.f32.mrf.mxu1  ;;  %v2085_v36 = vadd.f32 %v2084_v58, %v1916_v1 }
 0x1c1   : >> { %2643 = vpow2.f32 %v2371_v33  ;;  %v2373_v12 = vmul.f32 1.442695, %v2326_v2  ;;  %v2329_v8 = vsub.f32 0.0, %v2297_v35  ;;  %v2298_v60 = vmul.f32 %v2266_v4, %v2266_v4  ;;  %v2086_v57 = vpop.f32.mrf.mxu0 }
 0x1c2   : >> { %v2632_v34 = vpop.eup %2631  ;;  %v2269_v29 = vsub.f32 %v2208_v54, %v4148_v30  ;;  %v2210_v15 = vadd.f32 %v2209_v38, %v2073_v55  ;;  %v2214_v17 = vpop.f32.mrf.mxu1  ;;  %v2087_v18 = vadd.f32 %v2086_v57, %v1918_v19 }
 0x1c3   : >> { %2414 = vst [vmem:[%s4012_s27 + $0x10] sm:$0xff] %v2632_v34  ;;  %2645 = vpow2.f32 %v2373_v12  ;;  %v2379_v9 = vmul.f32 1.442695, %v2329_v8  ;;  %v2215_v52 = vadd.f32 %v2214_v17, %v2078_v48  ;;  %v2330_v5 = vsub.f32 0.0, %v2298_v60 }
 0x1c4   : >> { %v2634_v31 = vpop.eup %2633  ;;  %v2301_v24 = vmul.f32 %v2269_v29, %v2269_v29  ;;  %v2270_v47 = vsub.f32 %v2210_v15, %v4151_v45  ;;  %v2216_v23 = vpop.f32.mrf.mxu1 }
 0x1c5   : >> { %2415 = vst [vmem:[%s4012_s27 + $0x18] sm:$0xff] %v2634_v31  ;;  %2647 = vpow2.f32 %v2379_v9  ;;  %v2273_v21 = vsub.f32 %v2215_v52, %v4148_v30  ;;  %v2217_v26 = vadd.f32 %v2216_v23, %v2080_v43  ;;  %v2381_v39 = vmul.f32 1.442695, %v2330_v5 }
 0x1c6   : >> { %v2636_v16 = vpop.eup %2635  ;;  %v2333_v63 = vsub.f32 0.0, %v2301_v24  ;;  %v2302_v20 = vmul.f32 %v2270_v47, %v2270_v47  ;;  %v2221_v25 = vpop.f32.mrf.mxu1 }
 0x1c7   : >> { %2418 = vst [vmem:[%s4012_s27 + $0x30] sm:$0xff] %v2636_v16  ;;  %v2305_v3 = vmul.f32 %v2273_v21, %v2273_v21  ;;  %v2274_v46 = vsub.f32 %v2217_v26, %v4151_v45  ;;  %v2222_v41 = vadd.f32 %v2221_v25, %v2085_v36  ;;  %2649 = vpow2.f32 %v2381_v39 }
 0x1c8   : >> { %v2387_v53 = vmul.f32 1.442695, %v2333_v63  ;;  %v2334_v10 = vsub.f32 0.0, %v2302_v20  ;;  %v2223_v37 = vpop.f32.mrf.mxu1  ;;  %v2638_v50 = vpop.eup %2637 }
 0x1c9   : >> { %v2337_v11 = vsub.f32 0.0, %v2305_v3  ;;  %v2306_v42 = vmul.f32 %v2274_v46, %v2274_v46  ;;  %v2277_v7 = vsub.f32 %v2222_v41, %v4148_v30  ;;  %v2224_v44 = vadd.f32 %v2223_v37, %v2087_v18  ;;  %2419 = vst [vmem:[%s4012_s27 + $0x38] sm:$0xff] %v2638_v50 }
 0x1ca   : >> { %2651 = vpow2.f32 %v2387_v53  ;;  %v2389_v14 = vmul.f32 1.442695, %v2334_v10 }
 0x1cb   : >> { %v2640_v32 = vpop.eup %2639  ;;  %v2395_v61 = vmul.f32 1.442695, %v2337_v11  ;;  %v2338_v28 = vsub.f32 0.0, %v2306_v42  ;;  %v2309_v13 = vmul.f32 %v2277_v7, %v2277_v7  ;;  %v2278_v62 = vsub.f32 %v2224_v44, %v4151_v45 }
 0x1cc   : >> { %2422 = vst [vmem:[%s4012_s27 + $0x50] sm:$0xff] %v2640_v32  ;;  %2653 = vpow2.f32 %v2389_v14 }
 0x1cd   : >> { %v2642_v49 = vpop.eup %2641  ;;  %2655 = vpow2.f32 %v2395_v61  ;;  %v2397_v40 = vmul.f32 1.442695, %v2338_v28  ;;  %v2341_v30 = vsub.f32 0.0, %v2309_v13  ;;  %v2310_v56 = vmul.f32 %v2278_v62, %v2278_v62 }
 0x1ce   : >> { %v2644_v27 = vpop.eup %2643  ;;  %2423 = vst [vmem:[%s4012_s27 + $0x58] sm:$0xff] %v2642_v49 }
 0x1cf   : >> { %2426 = vst [vmem:[%s4012_s27 + $0x70] sm:$0xff] %v2644_v27  ;;  %2657 = vpow2.f32 %v2397_v40  ;;  %v2403_v51 = vmul.f32 1.442695, %v2341_v30  ;;  %v2342_v59 = vsub.f32 0.0, %v2310_v56 }
 0x1d0   : >> { %v2646_v0 = vpop.eup %2645 }
 0x1d1   : >> { %2427 = vst [vmem:[%s4012_s27 + $0x78] sm:$0xff] %v2646_v0  ;;  %2659 = vpow2.f32 %v2403_v51  ;;  %v2405_v45 = vmul.f32 1.442695, %v2342_v59 }
 0x1d2   : >> { %v2648_v22 = vpop.eup %2647 }
 0x1d3   : >> { %2430 = vst [vmem:[%s4012_s27 + $0x90] sm:$0xff] %v2648_v22  ;;  %2661 = vpow2.f32 %v2405_v45 }
 0x1d4   : >> { %v2650_v33 = vpop.eup %2649 }
 0x1d5   : >> { %2431 = vst [vmem:[%s4012_s27 + $0x98] sm:$0xff] %v2650_v33 }
 0x1d7   : >> { %v2652_v2 = vpop.eup %2651 }
 0x1d8   : >> { %2434 = vst [vmem:[%s4012_s27 + $0xb0] sm:$0xff] %v2652_v2 }
 0x1d9   : >> { %v2654_v35 = vpop.eup %2653 }
 0x1da   : >> { %v2656_v55 = vpop.eup %2655  ;;  %2435 = vst [vmem:[%s4012_s27 + $0xb8] sm:$0xff] %v2654_v35 }
 0x1db   : >> { %2438 = vst [vmem:[%s4012_s27 + $0xd0] sm:$0xff] %v2656_v55 }
 0x1dc   : >> { %v2658_v4 = vpop.eup %2657 }
 0x1dd   : >> { %2439 = vst [vmem:[%s4012_s27 + $0xd8] sm:$0xff] %v2658_v4  ;;  %209 = sbr.rel (!%p207_p11) target bundleno = 37 (0x25), region = 76 }
 0x1de   : >> { %v2660_v58 = vpop.eup %2659 }
 0x1df   : >> { %2442 = vst [vmem:[%s4012_s27 + $0xf0] sm:$0xff] %v2660_v58 }
 0x1e0   : >> { %v2662_v54 = vpop.eup %2661 }
 0x1e1   : >> { %2443 = vst [vmem:[%s4012_s27 + $0xf8] sm:$0xff] %v2662_v54 }
 0x1e2   : > { %2676 = shalt.err (!%p2673_p4)
}
 0x1e3   : > { %s2677_s24 = scalar_lea.hbm %s4242_s30, 16384  ;;  %s2681_s10 = scalar_lea.hbm %s4293_s3, 32768 }
 0x1e4   : > { %p2678_p7 = scmp.ne.s32.totalorder %s4242_s30, %s2677_s24  ;;  %p2682_p10 = scmp.lt.s32.totalorder %s4242_s30, %s4293_s3 }
 0x1e5   : > { %p2683_p11 = scmp.lt.s32.totalorder %s2681_s10, %s2677_s24 }
 0x1e6   : > { %p2679_p8 = pnand %p2678_p7, %p2795_p5 }
 0x1e7   : > { %p2684_p12 = por %p2683_p11, %p2682_p10 }
 0x1e8   : > { %p2680_p9 = pneg %p2679_p8 }
 0x1ea   : > { %p2685_p13 = pnand %p2684_p12, %p2680_p9 }
 0x1ec   : > { %2688 = shalt.err (!%p2685_p13)
}
 0x1ed   : > { %s2735_s19 = smov 512   ;;  %s2736_s20 = smov 32  }
 0x1ee   : > { %2549 = dma.vmem_to_hbm [thread:$0]  (%p2795_p5), %s4246_s4, 16384, %s4242_s30, %s4250_s6, %s2735_s19, %s2735_s19, %s2736_s20  }
 0x1ef PF: > { %p2555_p0 = scmp.ge.s32.totalorder %s2727_s15, 2  ;;  %s2474_s27 = sand.u32 1, %s2715_s12  }
 0x1f0   : > { %s2475_s28 = scalar_lea.sflag [#allocation3], %s2474_s27 }
 0x1f1   : > { %p2552_p1 = pnand %p2555_p0, %p2799_p6 }
 0x1f3   : > { %p2553_p2 = pneg %p2552_p1 }
 0x1f5   : > { %2710 = dma.done.wait (%p2553_p2), %s2475_s28, 16384  }
 0x1f6   : > { %2712 = vsyncadd (%p2553_p2), %s2475_s28, 4294950912  ;;  %p13_p3 = scmp.ge.s32.totalorder %s2782_s18, 4   ;;  %s4555_s12 = smov %s2719_s13 }
 0x1f7   : > { %s4556_s13 = smov %s2723_s14  ;;  %s4557_s14 = smov %s2793_s21 }
 0x1f8   : > { %s4558_s15 = smov %s2782_s18  ;;  %15 = sbr.rel (!%p13_p3) target bundleno = 3 (0x3), region = 87 }
 0x1fd   :  { %2480 = vsyncpa [#allocation3], 1 }
 0x1fe   :  { %2482 = vsyncpa [#allocation3 + $0x1], 1 }

</bundles_post_ra>
